<compile_context>
chip_gen: v5e
topology: v5e:2x2
jax: 0.10.0
libtpu: 0.0.40
codegen_flags: <defaults>
</compile_context>

<pallas_src>
import math

import numpy as np
import jax
import jax.numpy as jnp
from jax import lax
from jax.experimental import pallas as pl
from jax.experimental.pallas import tpu as pltpu

LANE = 128            # TPU lane width; all channel dims are padded to this
_NEG_INF = -1e30


# ----------------------------------------------------------------------------
# Fused kernel: whole network for ONE batch sample per grid step.
# ----------------------------------------------------------------------------
def _make_fused_kernel(cfgs, L):
    def kernel(*refs):
        x_ref, out_ref = refs[0], refs[-1]
        pos = 1

        # Causal mask built in-kernel (no (L,L) DMA), hoisted out of all loops.
        row = lax.broadcasted_iota(jnp.int32, (L, L), 0)
        col = lax.broadcasted_iota(jnp.int32, (L, L), 1)
        causal_bias = jnp.where(col <= row, 0.0, _NEG_INF).astype(jnp.float32)
        # Time-step index per row, to zero the pre-history rows of rolled taps.
        tpos = lax.broadcasted_iota(jnp.int32, (L, LANE), 0)

        act = x_ref[0]                                   # (L, 128) f32 slab

        for cfg in cfgs:
            K, H = cfg["ksize"], cfg["heads"]
            n_sub, dil = cfg["n_sub"], cfg["dilation"]

            w_proj, b_proj = refs[pos], refs[pos + 1]    # (128,3H*128) bf16 / (1,3H*128) f32
            w_lin, b_lin = refs[pos + 2], refs[pos + 3]  # (128,128) bf16 / (1,128) f32
            pos += 4
            conv_refs = []
            for _ in range(n_sub):
                conv_refs.append((refs[pos], refs[pos + 1]))
                pos += 2
            if cfg["has_down"]:
                w_dn, b_dn = refs[pos], refs[pos + 1]
                pos += 2
            else:
                w_dn = b_dn = None

            blk_in = act
            x_bf = blk_in.astype(jnp.bfloat16)

            # ---- causal multi-head self-attention (nn.MultiheadAttention) ----
            # One wide lane-dense projection for all heads' q / k / vo
            # (v-proj and out_proj folded host-side into "vo").
            proj = jnp.dot(x_bf, w_proj[...],
                           preferred_element_type=jnp.float32) + b_proj[...]
            proj_bf = proj.astype(jnp.bfloat16)

            attn = None
            for h in range(H):
                base = 3 * h * LANE                       # 128-aligned slices
                q_h = proj_bf[:, base:base + LANE]
                k_h = proj_bf[:, base + LANE:base + 2 * LANE]
                vo_h = proj_bf[:, base + 2 * LANE:base + 3 * LANE]
                # q @ k^T (contract last dims, full 128-deep; pad cols are 0)
                s = lax.dot_general(q_h, k_h, (((1,), (1,)), ((), ())),
                                    preferred_element_type=jnp.float32)
                s = s + causal_bias
                s = s - jnp.max(s, axis=-1, keepdims=True)
                p = jnp.exp(s)
                p = p * pl.reciprocal(jnp.sum(p, axis=-1, keepdims=True),
                                      approx=True)
                o_h = jnp.dot(p.astype(jnp.bfloat16), vo_h,
                              preferred_element_type=jnp.float32)
                attn = o_h if attn is None else attn + o_h

            # ---- linear_cat (out_proj bias folded into b_lin host-side) ----
            h_cur = jnp.dot(attn.astype(jnp.bfloat16), w_lin[...],
                            preferred_element_type=jnp.float32) + b_lin[...]

            # ---- conv stack: [weight_norm Conv1d -> Chomp1d -> ReLU -> Drop]*n
            for (w_tap, b_conv) in conv_refs:
                # one wide matmul producing all K tap responses at once
                z = jnp.dot(h_cur.astype(jnp.bfloat16), w_tap[...],
                            preferred_element_type=jnp.float32)
                y = z[:, (K - 1) * LANE:K * LANE] + b_conv[...]   # zero-shift tap
                for kk in range(K - 1):
                    shift = (K - 1 - kk) * dil
                    # causal temporal shift: sublane roll + iota mask (no MXU,
                    # no VMEM-resident shift operators)
                    rolled = pltpu.roll(z[:, kk * LANE:(kk + 1) * LANE],
                                        shift, axis=0)
                    y = y + jnp.where(tpos >= shift, rolled, 0.0)
                h_cur = jnp.maximum(y, 0.0)   # ReLU; Dropout == identity (eval)

            # ---- residual (1x1 Conv1d downsample if channels change) ----
            if w_dn is not None:
                res = jnp.dot(x_bf, w_dn[...],
                              preferred_element_type=jnp.float32) + b_dn[...]
            else:
                res = blk_in
            act = jnp.maximum(h_cur + res, 0.0)

        out_ref[0] = act

    return kernel


def tcan_forward(x, kernel_inputs, cfgs):
    """Full TemporalConvAttnNet forward: x (B, L, E) -> (B, L, C_last)."""
    B, L, E0 = x.shape
    C_last = cfgs[-1]["c_out"]
    x_pad = jnp.pad(x, ((0, 0), (0, 0), (0, LANE - E0)))   # lane-dense input

    sample_spec = pl.BlockSpec((1, L, LANE), lambda b: (b, 0, 0))
    weight_specs = [
        pl.BlockSpec(op.shape, lambda b, _nd=op.ndim: (0,) * _nd)
        for op in kernel_inputs
    ]

    out = pl.pallas_call(
        _make_fused_kernel(cfgs, L),
        out_shape=jax.ShapeDtypeStruct((B, L, LANE), jnp.float32),
        grid=(B,),
        in_specs=[sample_spec] + weight_specs,
        out_specs=pl.BlockSpec((1, L, LANE), lambda b: (b, 0, 0)),
        compiler_params=pltpu.CompilerParams(
            dimension_semantics=("parallel",),          # shard samples on v7x
            vmem_limit_bytes=32 * 1024 * 1024),
    )(x_pad, *kernel_inputs)
    return out[:, :, :C_last]


# ----------------------------------------------------------------------------
# Host-side parameter packing (done once, outside the kernel)
# ----------------------------------------------------------------------------
def pack_block_params(raw, cfg):
    E, C_out, H, K = cfg["c_in"], cfg["c_out"], cfg["heads"], cfg["ksize"]
    n_sub = cfg["n_sub"]
    d = E // H
    scale = 1.0 / math.sqrt(d)

    inw = np.asarray(raw["in_proj_w"], np.float32)       # (3E, E)
    inb = np.asarray(raw["in_proj_b"], np.float32)       # (3E,)
    outw = np.asarray(raw["out_proj_w"], np.float32)     # (E, E)
    outb = np.asarray(raw["out_proj_b"], np.float32)     # (E,)
    linw = np.asarray(raw["lin_w"], np.float32)          # (E, E)
    linb = np.asarray(raw["lin_b"], np.float32)          # (E,)

    # Fused per-head projection: per head h the column blocks are
    #   [3h*128 .. ) = q_h (1/sqrt(d) folded), k_h, vo_h (= V_h @ out_proj_h).
    w_proj = np.zeros((LANE, 3 * H * LANE), np.float32)
    b_proj = np.zeros((1, 3 * H * LANE), np.float32)
    for h in range(H):
        qs, ks, vs = slice(h * d, (h + 1) * d), \
                     slice(E + h * d, E + (h + 1) * d), \
                     slice(2 * E + h * d, 2 * E + (h + 1) * d)
        wo_h = outw[:, h * d:(h + 1) * d].T              # (d, E)
        base = 3 * h * LANE
        w_proj[:E, base:base + d] = inw[qs, :].T * scale
        b_proj[0, base:base + d] = inb[qs] * scale
        w_proj[:E, base + LANE:base + LANE + d] = inw[ks, :].T
        b_proj[0, base + LANE:base + LANE + d] = inb[ks]
        w_proj[:E, base + 2 * LANE:base + 2 * LANE + E] = inw[vs, :].T @ wo_h
        b_proj[0, base + 2 * LANE:base + 2 * LANE + E] = inb[vs] @ wo_h

    w_lin = np.zeros((LANE, LANE), np.float32)
    w_lin[:E, :E] = linw.T
    b_lin = np.zeros((1, LANE), np.float32)
    b_lin[0, :E] = linb + outb @ linw.T                  # out_proj bias folded

    params = [jnp.asarray(w_proj, jnp.bfloat16), jnp.asarray(b_proj),
              jnp.asarray(w_lin, jnp.bfloat16), jnp.asarray(b_lin)]

    c_prev = E
    for s_i in range(n_sub):
        w = np.asarray(raw["conv_w"][s_i], np.float32)   # (C_out, c_prev, K)
        w_tap = np.zeros((LANE, K * LANE), np.float32)
        for kk in range(K):
            w_tap[:c_prev, kk * LANE:kk * LANE + C_out] = w[:, :, kk].T
        b_conv = np.zeros((1, LANE), np.float32)
        b_conv[0, :C_out] = np.asarray(raw["conv_b"][s_i], np.float32)
        params += [jnp.asarray(w_tap, jnp.bfloat16), jnp.asarray(b_conv)]
        c_prev = C_out

    if cfg["has_down"]:
        w_dn = np.zeros((LANE, LANE), np.float32)
        w_dn[:E, :C_out] = np.asarray(raw["down_w"], np.float32)[:, :, 0].T
        b_dn = np.zeros((1, LANE), np.float32)
        b_dn[0, :C_out] = np.asarray(raw["down_b"], np.float32)
        params += [jnp.asarray(w_dn, jnp.bfloat16), jnp.asarray(b_dn)]
    return params


# ----------------------------------------------------------------------------
# Deterministic synthetic parameters (PyTorch layouts), bf16-representable so
# the kernel's bf16 MXU inputs introduce no weight-rounding error vs. the ref.
# ----------------------------------------------------------------------------
def _bf16_representable(a):
    return a.astype(jnp.bfloat16).astype(jnp.float32)


def init_raw_block_params(key, cfg):
    E, C_out, K, n_sub = cfg["c_in"], cfg["c_out"], cfg["ksize"], cfg["n_sub"]
    keys = list(jax.random.split(key, 10 + 2 * n_sub))
    it = iter(keys)

    def nrm(shape, scl):
        return _bf16_representable(
            jax.random.normal(next(it), shape, jnp.float32) * scl)

    raw = dict(
        in_proj_w=nrm((3 * E, E), 1.0 / math.sqrt(E)),
        in_proj_b=nrm((3 * E,), 0.02),
        out_proj_w=nrm((E, E), 1.0 / math.sqrt(E)),
        out_proj_b=nrm((E,), 0.02),
        lin_w=nrm((E, E), 1.0 / math.sqrt(E)),
        lin_b=nrm((E,), 0.02),
        conv_w=[], conv_b=[],
    )
    c_prev = E
    for _ in range(n_sub):
        raw["conv_w"].append(nrm((C_out, c_prev, K), 0.05))   # Conv1d layout
        raw["conv_b"].append(nrm((C_out,), 0.02))
        c_prev = C_out
    if cfg["has_down"]:
        raw["down_w"] = nrm((C_out, E, 1), 0.05)
        raw["down_b"] = nrm((C_out,), 0.02)
    else:
        raw["down_w"] = None
        raw["down_b"] = None
    return raw


# ----------------------------------------------------------------------------
# Pure-JAX reference (same math as the PyTorch module, XLA path, f32)
# ----------------------------------------------------------------------------
def block_reference(x, raw, cfg):
    B, L, _ = x.shape
    E, C_out, H, K = cfg["c_in"], cfg["c_out"], cfg["heads"], cfg["ksize"]
    dil, n_sub = cfg["dilation"], cfg["n_sub"]
    d = E // H
    pad = (K - 1) * dil
    inw, inb = raw["in_proj_w"], raw["in_proj_b"]

    def attn_one(x2d):
        q = x2d @ inw[0:E].T + inb[0:E]
        k = x2d @ inw[E:2 * E].T + inb[E:2 * E]
        v = x2d @ inw[2 * E:3 * E].T + inb[2 * E:3 * E]
        allowed = jnp.tril(jnp.ones((L, L), bool))
        heads = []
        for h in range(H):
            sl = slice(h * d, (h + 1) * d)
            s = (q[:, sl] @ k[:, sl].T) / math.sqrt(d)
            s = jnp.where(allowed, s, -jnp.inf)
            p = jax.nn.softmax(s, axis=-1)
            heads.append(p @ v[:, sl])
        a = jnp.concatenate(heads, axis=-1)
        return a @ raw["out_proj_w"].T + raw["out_proj_b"]

    attn = jax.vmap(attn_one)(x)                         # (B, L, E)
    h_cur = attn @ raw["lin_w"].T + raw["lin_b"]         # linear_cat
    for s_i in range(n_sub):
        w = raw["conv_w"][s_i]
        b = raw["conv_b"][s_i]
        hp = jnp.pad(h_cur, ((0, 0), (pad, 0), (0, 0)))  # Conv1d pad + Chomp1d
        acc = jnp.zeros((B, L, C_out), jnp.float32) + b
        for kk in range(K):
            acc = acc + hp[:, kk * dil:kk * dil + L, :] @ w[:, :, kk].T
        h_cur = jax.nn.relu(acc)
    if raw["down_w"] is not None:
        res = x @ raw["down_w"][:, :, 0].T + raw["down_b"]
    else:
        res = x
    return jax.nn.relu(h_cur + res)


# ----------------------------------------------------------------------------
if __name__ == "__main__":
    # Small, module-consistent shapes.
    B, L = 2, 16                 # batch, seq_length
    emb_size = 16
    num_channels = [32, 32]
    num_sub_blocks = 2
    num_heads = 2
    kernel_size = 3

    key = jax.random.PRNGKey(0)
    key, kx = jax.random.split(key)
    x = _bf16_representable(jax.random.normal(kx, (B, L, emb_size), jnp.float32))

    cfgs, raws = [], []
    c_in = emb_size
    for i, c_out in enumerate(num_channels):
        cfg = dict(c_in=c_in, c_out=c_out, heads=num_heads, ksize=kernel_size,
                   dilation=2 ** i, n_sub=num_sub_blocks,
                   has_down=(c_in != c_out), seq_len=L)
        key, kp = jax.random.split(key)
        cfgs.append(cfg)
        raws.append(init_raw_block_params(kp, cfg))
        c_in = c_out

    # Pack everything (lane-padded, bf16 weights) for the fused kernel.
    kernel_inputs = []
    for raw, cfg in zip(raws, cfgs):
        kernel_inputs += pack_block_params(raw, cfg)

    out = tcan_forward(x, kernel_inputs, cfgs)
    out = jax.block_until_ready(out)

    # Reference check (pure JAX / XLA path, f32, PyTorch-convention params).
    ref = x
    for raw, cfg in zip(raws, cfgs):
        ref = block_reference(ref, raw, cfg)
    ref = jax.block_until_ready(ref)

    # bf16 MXU inputs (f32 accumulation) => slightly looser parity vs the f32
    # reference, per the performance-review correctness note.
    np.testing.assert_allclose(np.asarray(out), np.asarray(ref),
                               rtol=5e-2, atol=5e-2)
    print("KERNEL_OK")
</pallas_src>

<mosaic_0001>
module attributes {stable_mosaic.version = 11 : i64} {
  func.func @kernel(%arg0: i32, %arg1: memref<1x16x128xf32, #tpu.memory_space<vmem>>, %arg2: memref<128x768xbf16, #tpu.memory_space<vmem>>, %arg3: memref<1x768xf32, #tpu.memory_space<vmem>>, %arg4: memref<128x128xbf16, #tpu.memory_space<vmem>>, %arg5: memref<1x128xf32, #tpu.memory_space<vmem>>, %arg6: memref<128x384xbf16, #tpu.memory_space<vmem>>, %arg7: memref<1x128xf32, #tpu.memory_space<vmem>>, %arg8: memref<128x384xbf16, #tpu.memory_space<vmem>>, %arg9: memref<1x128xf32, #tpu.memory_space<vmem>>, %arg10: memref<128x128xbf16, #tpu.memory_space<vmem>>, %arg11: memref<1x128xf32, #tpu.memory_space<vmem>>, %arg12: memref<128x768xbf16, #tpu.memory_space<vmem>>, %arg13: memref<1x768xf32, #tpu.memory_space<vmem>>, %arg14: memref<128x128xbf16, #tpu.memory_space<vmem>>, %arg15: memref<1x128xf32, #tpu.memory_space<vmem>>, %arg16: memref<128x384xbf16, #tpu.memory_space<vmem>>, %arg17: memref<1x128xf32, #tpu.memory_space<vmem>>, %arg18: memref<128x384xbf16, #tpu.memory_space<vmem>>, %arg19: memref<1x128xf32, #tpu.memory_space<vmem>>, %arg20: memref<1x16x128xf32, #tpu.memory_space<vmem>>) attributes {dimension_semantics = [#tpu.dimension_semantics<parallel>], iteration_bounds = array<i64: 2>, scalar_prefetch = 0 : i64, scratch_operands = 0 : i64, tpu.core_type = #tpu.core_type<tc>, window_params = [{transform_indices = @transform_0, window_bounds = array<i64: 1, 16, 128>}, {pipeline_mode = #tpu.pipeline_mode<synchronous>, transform_indices = @transform_1, window_bounds = array<i64: 128, 768>}, {pipeline_mode = #tpu.pipeline_mode<synchronous>, transform_indices = @transform_2, window_bounds = array<i64: 1, 768>}, {pipeline_mode = #tpu.pipeline_mode<synchronous>, transform_indices = @transform_3, window_bounds = array<i64: 128, 128>}, {pipeline_mode = #tpu.pipeline_mode<synchronous>, transform_indices = @transform_4, window_bounds = array<i64: 1, 128>}, {pipeline_mode = #tpu.pipeline_mode<synchronous>, transform_indices = @transform_5, window_bounds = array<i64: 128, 384>}, {pipeline_mode = #tpu.pipeline_mode<synchronous>, transform_indices = @transform_6, window_bounds = array<i64: 1, 128>}, {pipeline_mode = #tpu.pipeline_mode<synchronous>, transform_indices = @transform_7, window_bounds = array<i64: 128, 384>}, {pipeline_mode = #tpu.pipeline_mode<synchronous>, transform_indices = @transform_8, window_bounds = array<i64: 1, 128>}, {pipeline_mode = #tpu.pipeline_mode<synchronous>, transform_indices = @transform_9, window_bounds = array<i64: 128, 128>}, {pipeline_mode = #tpu.pipeline_mode<synchronous>, transform_indices = @transform_10, window_bounds = array<i64: 1, 128>}, {pipeline_mode = #tpu.pipeline_mode<synchronous>, transform_indices = @transform_11, window_bounds = array<i64: 128, 768>}, {pipeline_mode = #tpu.pipeline_mode<synchronous>, transform_indices = @transform_12, window_bounds = array<i64: 1, 768>}, {pipeline_mode = #tpu.pipeline_mode<synchronous>, transform_indices = @transform_13, window_bounds = array<i64: 128, 128>}, {pipeline_mode = #tpu.pipeline_mode<synchronous>, transform_indices = @transform_14, window_bounds = array<i64: 1, 128>}, {pipeline_mode = #tpu.pipeline_mode<synchronous>, transform_indices = @transform_15, window_bounds = array<i64: 128, 384>}, {pipeline_mode = #tpu.pipeline_mode<synchronous>, transform_indices = @transform_16, window_bounds = array<i64: 1, 128>}, {pipeline_mode = #tpu.pipeline_mode<synchronous>, transform_indices = @transform_17, window_bounds = array<i64: 128, 384>}, {pipeline_mode = #tpu.pipeline_mode<synchronous>, transform_indices = @transform_18, window_bounds = array<i64: 1, 128>}, {transform_indices = @transform_19, window_bounds = array<i64: 1, 16, 128>}]} {
    %0 = tpu.iota {dimensions = array<i32: 0>} : vector<16x16xi32>
    %1 = tpu.iota {dimensions = array<i32: 1>} : vector<16x16xi32>
    %2 = arith.cmpi sle, %1, %0 : vector<16x16xi32>
    %cst = arith.constant 0.000000e+00 : f32
    %cst_0 = arith.constant -1.000000e+30 : f32
    %3 = vector.broadcast %cst : f32 to vector<16x16xf32>
    %4 = vector.broadcast %cst_0 : f32 to vector<16x16xf32>
    %5 = arith.select %2, %3, %4 : vector<16x16xi1>, vector<16x16xf32>
    %6 = tpu.iota {dimensions = array<i32: 0>} : vector<16x128xi32>
    %c0 = arith.constant 0 : index
    %c0_1 = arith.constant 0 : index
    %c0_2 = arith.constant 0 : index
    %7 = vector.load %arg1[%c0, %c0_1, %c0_2] : memref<1x16x128xf32, #tpu.memory_space<vmem>>, vector<1x16x128xf32>
    %8 = vector.shape_cast %7 : vector<1x16x128xf32> to vector<16x128xf32>
    %9 = arith.truncf %8 : vector<16x128xf32> to vector<16x128xbf16>
    %c0_3 = arith.constant 0 : index
    %c0_4 = arith.constant 0 : index
    %10 = vector.load %arg2[%c0_3, %c0_4] : memref<128x768xbf16, #tpu.memory_space<vmem>>, vector<128x768xbf16>
    %cst_5 = arith.constant dense<0.000000e+00> : vector<16x768xf32>
    %11 = tpu.matmul %9, %10, %cst_5 {dimension_numbers = #tpu.dot_dimension_numbers<[1], [0], [0], [1], [0, 0, 1, 1], [], []>} : vector<16x128xbf16>, vector<128x768xbf16>, vector<16x768xf32> -> vector<16x768xf32>
    %c0_6 = arith.constant 0 : index
    %c0_7 = arith.constant 0 : index
    %12 = vector.load %arg3[%c0_6, %c0_7] : memref<1x768xf32, #tpu.memory_space<vmem>>, vector<1x768xf32>
    %13 = vector.broadcast %12 : vector<1x768xf32> to vector<16x768xf32>
    %14 = arith.addf %11, %13 : vector<16x768xf32>
    %15 = arith.truncf %14 : vector<16x768xf32> to vector<16x768xbf16>
    %16 = vector.extract_strided_slice %15 {offsets = [0, 0], sizes = [16, 128], strides = [1, 1]} : vector<16x768xbf16> to vector<16x128xbf16>
    %17 = vector.extract_strided_slice %15 {offsets = [0, 128], sizes = [16, 128], strides = [1, 1]} : vector<16x768xbf16> to vector<16x128xbf16>
    %18 = vector.extract_strided_slice %15 {offsets = [0, 256], sizes = [16, 128], strides = [1, 1]} : vector<16x768xbf16> to vector<16x128xbf16>
    %cst_8 = arith.constant dense<0.000000e+00> : vector<16x16xf32>
    %19 = tpu.matmul %16, %17, %cst_8 {dimension_numbers = #tpu.dot_dimension_numbers<[1], [1], [0], [0], [0, 0, 1, 0], [], []>} : vector<16x128xbf16>, vector<16x128xbf16>, vector<16x16xf32> -> vector<16x16xf32>
    %20 = arith.addf %19, %5 : vector<16x16xf32>
    %cst_9 = arith.constant dense<0xFF800000> : vector<16xf32>
    %21 = vector.multi_reduction <maximumf>, %20, %cst_9 [1] : vector<16x16xf32> to vector<16xf32>
    %22 = vector.shape_cast %21 : vector<16xf32> to vector<16x1xf32>
    %23 = vector.broadcast %22 : vector<16x1xf32> to vector<16x16xf32>
    %24 = arith.subf %20, %23 : vector<16x16xf32>
    %25 = math.exp %24 : vector<16x16xf32>
    %cst_10 = arith.constant dense<0.000000e+00> : vector<16xf32>
    %26 = vector.multi_reduction <add>, %25, %cst_10 [1] : vector<16x16xf32> to vector<16xf32>
    %27 = vector.shape_cast %26 : vector<16xf32> to vector<16x1xf32>
    %28 = tpu.reciprocal %27 {approx = true} : vector<16x1xf32> -> vector<16x1xf32>
    %29 = vector.broadcast %28 : vector<16x1xf32> to vector<16x16xf32>
    %30 = arith.mulf %25, %29 : vector<16x16xf32>
    %31 = arith.truncf %30 : vector<16x16xf32> to vector<16x16xbf16>
    %cst_11 = arith.constant dense<0.000000e+00> : vector<16x128xf32>
    %32 = tpu.matmul %31, %18, %cst_11 {dimension_numbers = #tpu.dot_dimension_numbers<[1], [0], [0], [1], [0, 0, 1, 1], [], []>} : vector<16x16xbf16>, vector<16x128xbf16>, vector<16x128xf32> -> vector<16x128xf32>
    %33 = vector.extract_strided_slice %15 {offsets = [0, 384], sizes = [16, 128], strides = [1, 1]} : vector<16x768xbf16> to vector<16x128xbf16>
    %34 = vector.extract_strided_slice %15 {offsets = [0, 512], sizes = [16, 128], strides = [1, 1]} : vector<16x768xbf16> to vector<16x128xbf16>
    %35 = vector.extract_strided_slice %15 {offsets = [0, 640], sizes = [16, 128], strides = [1, 1]} : vector<16x768xbf16> to vector<16x128xbf16>
    %cst_12 = arith.constant dense<0.000000e+00> : vector<16x16xf32>
    %36 = tpu.matmul %33, %34, %cst_12 {dimension_numbers = #tpu.dot_dimension_numbers<[1], [1], [0], [0], [0, 0, 1, 0], [], []>} : vector<16x128xbf16>, vector<16x128xbf16>, vector<16x16xf32> -> vector<16x16xf32>
    %37 = arith.addf %36, %5 : vector<16x16xf32>
    %cst_13 = arith.constant dense<0xFF800000> : vector<16xf32>
    %38 = vector.multi_reduction <maximumf>, %37, %cst_13 [1] : vector<16x16xf32> to vector<16xf32>
    %39 = vector.shape_cast %38 : vector<16xf32> to vector<16x1xf32>
    %40 = vector.broadcast %39 : vector<16x1xf32> to vector<16x16xf32>
    %41 = arith.subf %37, %40 : vector<16x16xf32>
    %42 = math.exp %41 : vector<16x16xf32>
    %cst_14 = arith.constant dense<0.000000e+00> : vector<16xf32>
    %43 = vector.multi_reduction <add>, %42, %cst_14 [1] : vector<16x16xf32> to vector<16xf32>
    %44 = vector.shape_cast %43 : vector<16xf32> to vector<16x1xf32>
    %45 = tpu.reciprocal %44 {approx = true} : vector<16x1xf32> -> vector<16x1xf32>
    %46 = vector.broadcast %45 : vector<16x1xf32> to vector<16x16xf32>
    %47 = arith.mulf %42, %46 : vector<16x16xf32>
    %48 = arith.truncf %47 : vector<16x16xf32> to vector<16x16xbf16>
    %cst_15 = arith.constant dense<0.000000e+00> : vector<16x128xf32>
    %49 = tpu.matmul %48, %35, %cst_15 {dimension_numbers = #tpu.dot_dimension_numbers<[1], [0], [0], [1], [0, 0, 1, 1], [], []>} : vector<16x16xbf16>, vector<16x128xbf16>, vector<16x128xf32> -> vector<16x128xf32>
    %50 = arith.addf %32, %49 : vector<16x128xf32>
    %51 = arith.truncf %50 : vector<16x128xf32> to vector<16x128xbf16>
    %c0_16 = arith.constant 0 : index
    %c0_17 = arith.constant 0 : index
    %52 = vector.load %arg4[%c0_16, %c0_17] : memref<128x128xbf16, #tpu.memory_space<vmem>>, vector<128x128xbf16>
    %cst_18 = arith.constant dense<0.000000e+00> : vector<16x128xf32>
    %53 = tpu.matmul %51, %52, %cst_18 {dimension_numbers = #tpu.dot_dimension_numbers<[1], [0], [0], [1], [0, 0, 1, 1], [], []>} : vector<16x128xbf16>, vector<128x128xbf16>, vector<16x128xf32> -> vector<16x128xf32>
    %c0_19 = arith.constant 0 : index
    %c0_20 = arith.constant 0 : index
    %54 = vector.load %arg5[%c0_19, %c0_20] : memref<1x128xf32, #tpu.memory_space<vmem>>, vector<1x128xf32>
    %55 = vector.broadcast %54 : vector<1x128xf32> to vector<16x128xf32>
    %56 = arith.addf %53, %55 : vector<16x128xf32>
    %57 = arith.truncf %56 : vector<16x128xf32> to vector<16x128xbf16>
    %c0_21 = arith.constant 0 : index
    %c0_22 = arith.constant 0 : index
    %58 = vector.load %arg6[%c0_21, %c0_22] : memref<128x384xbf16, #tpu.memory_space<vmem>>, vector<128x384xbf16>
    %cst_23 = arith.constant dense<0.000000e+00> : vector<16x384xf32>
    %59 = tpu.matmul %57, %58, %cst_23 {dimension_numbers = #tpu.dot_dimension_numbers<[1], [0], [0], [1], [0, 0, 1, 1], [], []>} : vector<16x128xbf16>, vector<128x384xbf16>, vector<16x384xf32> -> vector<16x384xf32>
    %60 = vector.extract_strided_slice %59 {offsets = [0, 256], sizes = [16, 128], strides = [1, 1]} : vector<16x384xf32> to vector<16x128xf32>
    %c0_24 = arith.constant 0 : index
    %c0_25 = arith.constant 0 : index
    %61 = vector.load %arg7[%c0_24, %c0_25] : memref<1x128xf32, #tpu.memory_space<vmem>>, vector<1x128xf32>
    %62 = vector.broadcast %61 : vector<1x128xf32> to vector<16x128xf32>
    %63 = arith.addf %60, %62 : vector<16x128xf32>
    %64 = vector.extract_strided_slice %59 {offsets = [0, 0], sizes = [16, 128], strides = [1, 1]} : vector<16x384xf32> to vector<16x128xf32>
    %c2_i32 = arith.constant 2 : i32
    %65 = tpu.dynamic_rotate %64 by %c2_i32 dim 0 : vector<16x128xf32>, i32 -> vector<16x128xf32>
    %c2_i32_26 = arith.constant 2 : i32
    %66 = vector.broadcast %c2_i32_26 : i32 to vector<16x128xi32>
    %67 = arith.cmpi sge, %6, %66 : vector<16x128xi32>
    %cst_27 = arith.constant 0.000000e+00 : f32
    %68 = vector.broadcast %cst_27 : f32 to vector<16x128xf32>
    %69 = arith.select %67, %65, %68 : vector<16x128xi1>, vector<16x128xf32>
    %70 = arith.addf %63, %69 : vector<16x128xf32>
    %71 = vector.extract_strided_slice %59 {offsets = [0, 128], sizes = [16, 128], strides = [1, 1]} : vector<16x384xf32> to vector<16x128xf32>
    %c1_i32 = arith.constant 1 : i32
    %72 = tpu.dynamic_rotate %71 by %c1_i32 dim 0 : vector<16x128xf32>, i32 -> vector<16x128xf32>
    %c1_i32_28 = arith.constant 1 : i32
    %73 = vector.broadcast %c1_i32_28 : i32 to vector<16x128xi32>
    %74 = arith.cmpi sge, %6, %73 : vector<16x128xi32>
    %cst_29 = arith.constant 0.000000e+00 : f32
    %75 = vector.broadcast %cst_29 : f32 to vector<16x128xf32>
    %76 = arith.select %74, %72, %75 : vector<16x128xi1>, vector<16x128xf32>
    %77 = arith.addf %70, %76 : vector<16x128xf32>
    %cst_30 = arith.constant 0.000000e+00 : f32
    %78 = vector.broadcast %cst_30 : f32 to vector<16x128xf32>
    %79 = arith.maximumf %77, %78 : vector<16x128xf32>
    %80 = arith.truncf %79 : vector<16x128xf32> to vector<16x128xbf16>
    %c0_31 = arith.constant 0 : index
    %c0_32 = arith.constant 0 : index
    %81 = vector.load %arg8[%c0_31, %c0_32] : memref<128x384xbf16, #tpu.memory_space<vmem>>, vector<128x384xbf16>
    %cst_33 = arith.constant dense<0.000000e+00> : vector<16x384xf32>
    %82 = tpu.matmul %80, %81, %cst_33 {dimension_numbers = #tpu.dot_dimension_numbers<[1], [0], [0], [1], [0, 0, 1, 1], [], []>} : vector<16x128xbf16>, vector<128x384xbf16>, vector<16x384xf32> -> vector<16x384xf32>
    %83 = vector.extract_strided_slice %82 {offsets = [0, 256], sizes = [16, 128], strides = [1, 1]} : vector<16x384xf32> to vector<16x128xf32>
    %c0_34 = arith.constant 0 : index
    %c0_35 = arith.constant 0 : index
    %84 = vector.load %arg9[%c0_34, %c0_35] : memref<1x128xf32, #tpu.memory_space<vmem>>, vector<1x128xf32>
    %85 = vector.broadcast %84 : vector<1x128xf32> to vector<16x128xf32>
    %86 = arith.addf %83, %85 : vector<16x128xf32>
    %87 = vector.extract_strided_slice %82 {offsets = [0, 0], sizes = [16, 128], strides = [1, 1]} : vector<16x384xf32> to vector<16x128xf32>
    %c2_i32_36 = arith.constant 2 : i32
    %88 = tpu.dynamic_rotate %87 by %c2_i32_36 dim 0 : vector<16x128xf32>, i32 -> vector<16x128xf32>
    %c2_i32_37 = arith.constant 2 : i32
    %89 = vector.broadcast %c2_i32_37 : i32 to vector<16x128xi32>
    %90 = arith.cmpi sge, %6, %89 : vector<16x128xi32>
    %cst_38 = arith.constant 0.000000e+00 : f32
    %91 = vector.broadcast %cst_38 : f32 to vector<16x128xf32>
    %92 = arith.select %90, %88, %91 : vector<16x128xi1>, vector<16x128xf32>
    %93 = arith.addf %86, %92 : vector<16x128xf32>
    %94 = vector.extract_strided_slice %82 {offsets = [0, 128], sizes = [16, 128], strides = [1, 1]} : vector<16x384xf32> to vector<16x128xf32>
    %c1_i32_39 = arith.constant 1 : i32
    %95 = tpu.dynamic_rotate %94 by %c1_i32_39 dim 0 : vector<16x128xf32>, i32 -> vector<16x128xf32>
    %c1_i32_40 = arith.constant 1 : i32
    %96 = vector.broadcast %c1_i32_40 : i32 to vector<16x128xi32>
    %97 = arith.cmpi sge, %6, %96 : vector<16x128xi32>
    %cst_41 = arith.constant 0.000000e+00 : f32
    %98 = vector.broadcast %cst_41 : f32 to vector<16x128xf32>
    %99 = arith.select %97, %95, %98 : vector<16x128xi1>, vector<16x128xf32>
    %100 = arith.addf %93, %99 : vector<16x128xf32>
    %cst_42 = arith.constant 0.000000e+00 : f32
    %101 = vector.broadcast %cst_42 : f32 to vector<16x128xf32>
    %102 = arith.maximumf %100, %101 : vector<16x128xf32>
    %c0_43 = arith.constant 0 : index
    %c0_44 = arith.constant 0 : index
    %103 = vector.load %arg10[%c0_43, %c0_44] : memref<128x128xbf16, #tpu.memory_space<vmem>>, vector<128x128xbf16>
    %cst_45 = arith.constant dense<0.000000e+00> : vector<16x128xf32>
    %104 = tpu.matmul %9, %103, %cst_45 {dimension_numbers = #tpu.dot_dimension_numbers<[1], [0], [0], [1], [0, 0, 1, 1], [], []>} : vector<16x128xbf16>, vector<128x128xbf16>, vector<16x128xf32> -> vector<16x128xf32>
    %c0_46 = arith.constant 0 : index
    %c0_47 = arith.constant 0 : index
    %105 = vector.load %arg11[%c0_46, %c0_47] : memref<1x128xf32, #tpu.memory_space<vmem>>, vector<1x128xf32>
    %106 = vector.broadcast %105 : vector<1x128xf32> to vector<16x128xf32>
    %107 = arith.addf %104, %106 : vector<16x128xf32>
    %108 = arith.addf %102, %107 : vector<16x128xf32>
    %cst_48 = arith.constant 0.000000e+00 : f32
    %109 = vector.broadcast %cst_48 : f32 to vector<16x128xf32>
    %110 = arith.maximumf %108, %109 : vector<16x128xf32>
    %111 = arith.truncf %110 : vector<16x128xf32> to vector<16x128xbf16>
    %c0_49 = arith.constant 0 : index
    %c0_50 = arith.constant 0 : index
    %112 = vector.load %arg12[%c0_49, %c0_50] : memref<128x768xbf16, #tpu.memory_space<vmem>>, vector<128x768xbf16>
    %cst_51 = arith.constant dense<0.000000e+00> : vector<16x768xf32>
    %113 = tpu.matmul %111, %112, %cst_51 {dimension_numbers = #tpu.dot_dimension_numbers<[1], [0], [0], [1], [0, 0, 1, 1], [], []>} : vector<16x128xbf16>, vector<128x768xbf16>, vector<16x768xf32> -> vector<16x768xf32>
    %c0_52 = arith.constant 0 : index
    %c0_53 = arith.constant 0 : index
    %114 = vector.load %arg13[%c0_52, %c0_53] : memref<1x768xf32, #tpu.memory_space<vmem>>, vector<1x768xf32>
    %115 = vector.broadcast %114 : vector<1x768xf32> to vector<16x768xf32>
    %116 = arith.addf %113, %115 : vector<16x768xf32>
    %117 = arith.truncf %116 : vector<16x768xf32> to vector<16x768xbf16>
    %118 = vector.extract_strided_slice %117 {offsets = [0, 0], sizes = [16, 128], strides = [1, 1]} : vector<16x768xbf16> to vector<16x128xbf16>
    %119 = vector.extract_strided_slice %117 {offsets = [0, 128], sizes = [16, 128], strides = [1, 1]} : vector<16x768xbf16> to vector<16x128xbf16>
    %120 = vector.extract_strided_slice %117 {offsets = [0, 256], sizes = [16, 128], strides = [1, 1]} : vector<16x768xbf16> to vector<16x128xbf16>
    %cst_54 = arith.constant dense<0.000000e+00> : vector<16x16xf32>
    %121 = tpu.matmul %118, %119, %cst_54 {dimension_numbers = #tpu.dot_dimension_numbers<[1], [1], [0], [0], [0, 0, 1, 0], [], []>} : vector<16x128xbf16>, vector<16x128xbf16>, vector<16x16xf32> -> vector<16x16xf32>
    %122 = arith.addf %121, %5 : vector<16x16xf32>
    %cst_55 = arith.constant dense<0xFF800000> : vector<16xf32>
    %123 = vector.multi_reduction <maximumf>, %122, %cst_55 [1] : vector<16x16xf32> to vector<16xf32>
    %124 = vector.shape_cast %123 : vector<16xf32> to vector<16x1xf32>
    %125 = vector.broadcast %124 : vector<16x1xf32> to vector<16x16xf32>
    %126 = arith.subf %122, %125 : vector<16x16xf32>
    %127 = math.exp %126 : vector<16x16xf32>
    %cst_56 = arith.constant dense<0.000000e+00> : vector<16xf32>
    %128 = vector.multi_reduction <add>, %127, %cst_56 [1] : vector<16x16xf32> to vector<16xf32>
    %129 = vector.shape_cast %128 : vector<16xf32> to vector<16x1xf32>
    %130 = tpu.reciprocal %129 {approx = true} : vector<16x1xf32> -> vector<16x1xf32>
    %131 = vector.broadcast %130 : vector<16x1xf32> to vector<16x16xf32>
    %132 = arith.mulf %127, %131 : vector<16x16xf32>
    %133 = arith.truncf %132 : vector<16x16xf32> to vector<16x16xbf16>
    %cst_57 = arith.constant dense<0.000000e+00> : vector<16x128xf32>
    %134 = tpu.matmul %133, %120, %cst_57 {dimension_numbers = #tpu.dot_dimension_numbers<[1], [0], [0], [1], [0, 0, 1, 1], [], []>} : vector<16x16xbf16>, vector<16x128xbf16>, vector<16x128xf32> -> vector<16x128xf32>
    %135 = vector.extract_strided_slice %117 {offsets = [0, 384], sizes = [16, 128], strides = [1, 1]} : vector<16x768xbf16> to vector<16x128xbf16>
    %136 = vector.extract_strided_slice %117 {offsets = [0, 512], sizes = [16, 128], strides = [1, 1]} : vector<16x768xbf16> to vector<16x128xbf16>
    %137 = vector.extract_strided_slice %117 {offsets = [0, 640], sizes = [16, 128], strides = [1, 1]} : vector<16x768xbf16> to vector<16x128xbf16>
    %cst_58 = arith.constant dense<0.000000e+00> : vector<16x16xf32>
    %138 = tpu.matmul %135, %136, %cst_58 {dimension_numbers = #tpu.dot_dimension_numbers<[1], [1], [0], [0], [0, 0, 1, 0], [], []>} : vector<16x128xbf16>, vector<16x128xbf16>, vector<16x16xf32> -> vector<16x16xf32>
    %139 = arith.addf %138, %5 : vector<16x16xf32>
    %cst_59 = arith.constant dense<0xFF800000> : vector<16xf32>
    %140 = vector.multi_reduction <maximumf>, %139, %cst_59 [1] : vector<16x16xf32> to vector<16xf32>
    %141 = vector.shape_cast %140 : vector<16xf32> to vector<16x1xf32>
    %142 = vector.broadcast %141 : vector<16x1xf32> to vector<16x16xf32>
    %143 = arith.subf %139, %142 : vector<16x16xf32>
    %144 = math.exp %143 : vector<16x16xf32>
    %cst_60 = arith.constant dense<0.000000e+00> : vector<16xf32>
    %145 = vector.multi_reduction <add>, %144, %cst_60 [1] : vector<16x16xf32> to vector<16xf32>
    %146 = vector.shape_cast %145 : vector<16xf32> to vector<16x1xf32>
    %147 = tpu.reciprocal %146 {approx = true} : vector<16x1xf32> -> vector<16x1xf32>
    %148 = vector.broadcast %147 : vector<16x1xf32> to vector<16x16xf32>
    %149 = arith.mulf %144, %148 : vector<16x16xf32>
    %150 = arith.truncf %149 : vector<16x16xf32> to vector<16x16xbf16>
    %cst_61 = arith.constant dense<0.000000e+00> : vector<16x128xf32>
    %151 = tpu.matmul %150, %137, %cst_61 {dimension_numbers = #tpu.dot_dimension_numbers<[1], [0], [0], [1], [0, 0, 1, 1], [], []>} : vector<16x16xbf16>, vector<16x128xbf16>, vector<16x128xf32> -> vector<16x128xf32>
    %152 = arith.addf %134, %151 : vector<16x128xf32>
    %153 = arith.truncf %152 : vector<16x128xf32> to vector<16x128xbf16>
    %c0_62 = arith.constant 0 : index
    %c0_63 = arith.constant 0 : index
    %154 = vector.load %arg14[%c0_62, %c0_63] : memref<128x128xbf16, #tpu.memory_space<vmem>>, vector<128x128xbf16>
    %cst_64 = arith.constant dense<0.000000e+00> : vector<16x128xf32>
    %155 = tpu.matmul %153, %154, %cst_64 {dimension_numbers = #tpu.dot_dimension_numbers<[1], [0], [0], [1], [0, 0, 1, 1], [], []>} : vector<16x128xbf16>, vector<128x128xbf16>, vector<16x128xf32> -> vector<16x128xf32>
    %c0_65 = arith.constant 0 : index
    %c0_66 = arith.constant 0 : index
    %156 = vector.load %arg15[%c0_65, %c0_66] : memref<1x128xf32, #tpu.memory_space<vmem>>, vector<1x128xf32>
    %157 = vector.broadcast %156 : vector<1x128xf32> to vector<16x128xf32>
    %158 = arith.addf %155, %157 : vector<16x128xf32>
    %159 = arith.truncf %158 : vector<16x128xf32> to vector<16x128xbf16>
    %c0_67 = arith.constant 0 : index
    %c0_68 = arith.constant 0 : index
    %160 = vector.load %arg16[%c0_67, %c0_68] : memref<128x384xbf16, #tpu.memory_space<vmem>>, vector<128x384xbf16>
    %cst_69 = arith.constant dense<0.000000e+00> : vector<16x384xf32>
    %161 = tpu.matmul %159, %160, %cst_69 {dimension_numbers = #tpu.dot_dimension_numbers<[1], [0], [0], [1], [0, 0, 1, 1], [], []>} : vector<16x128xbf16>, vector<128x384xbf16>, vector<16x384xf32> -> vector<16x384xf32>
    %162 = vector.extract_strided_slice %161 {offsets = [0, 256], sizes = [16, 128], strides = [1, 1]} : vector<16x384xf32> to vector<16x128xf32>
    %c0_70 = arith.constant 0 : index
    %c0_71 = arith.constant 0 : index
    %163 = vector.load %arg17[%c0_70, %c0_71] : memref<1x128xf32, #tpu.memory_space<vmem>>, vector<1x128xf32>
    %164 = vector.broadcast %163 : vector<1x128xf32> to vector<16x128xf32>
    %165 = arith.addf %162, %164 : vector<16x128xf32>
    %166 = vector.extract_strided_slice %161 {offsets = [0, 0], sizes = [16, 128], strides = [1, 1]} : vector<16x384xf32> to vector<16x128xf32>
    %c4_i32 = arith.constant 4 : i32
    %167 = tpu.dynamic_rotate %166 by %c4_i32 dim 0 : vector<16x128xf32>, i32 -> vector<16x128xf32>
    %c4_i32_72 = arith.constant 4 : i32
    %168 = vector.broadcast %c4_i32_72 : i32 to vector<16x128xi32>
    %169 = arith.cmpi sge, %6, %168 : vector<16x128xi32>
    %cst_73 = arith.constant 0.000000e+00 : f32
    %170 = vector.broadcast %cst_73 : f32 to vector<16x128xf32>
    %171 = arith.select %169, %167, %170 : vector<16x128xi1>, vector<16x128xf32>
    %172 = arith.addf %165, %171 : vector<16x128xf32>
    %173 = vector.extract_strided_slice %161 {offsets = [0, 128], sizes = [16, 128], strides = [1, 1]} : vector<16x384xf32> to vector<16x128xf32>
    %c2_i32_74 = arith.constant 2 : i32
    %174 = tpu.dynamic_rotate %173 by %c2_i32_74 dim 0 : vector<16x128xf32>, i32 -> vector<16x128xf32>
    %c2_i32_75 = arith.constant 2 : i32
    %175 = vector.broadcast %c2_i32_75 : i32 to vector<16x128xi32>
    %176 = arith.cmpi sge, %6, %175 : vector<16x128xi32>
    %cst_76 = arith.constant 0.000000e+00 : f32
    %177 = vector.broadcast %cst_76 : f32 to vector<16x128xf32>
    %178 = arith.select %176, %174, %177 : vector<16x128xi1>, vector<16x128xf32>
    %179 = arith.addf %172, %178 : vector<16x128xf32>
    %cst_77 = arith.constant 0.000000e+00 : f32
    %180 = vector.broadcast %cst_77 : f32 to vector<16x128xf32>
    %181 = arith.maximumf %179, %180 : vector<16x128xf32>
    %182 = arith.truncf %181 : vector<16x128xf32> to vector<16x128xbf16>
    %c0_78 = arith.constant 0 : index
    %c0_79 = arith.constant 0 : index
    %183 = vector.load %arg18[%c0_78, %c0_79] : memref<128x384xbf16, #tpu.memory_space<vmem>>, vector<128x384xbf16>
    %cst_80 = arith.constant dense<0.000000e+00> : vector<16x384xf32>
    %184 = tpu.matmul %182, %183, %cst_80 {dimension_numbers = #tpu.dot_dimension_numbers<[1], [0], [0], [1], [0, 0, 1, 1], [], []>} : vector<16x128xbf16>, vector<128x384xbf16>, vector<16x384xf32> -> vector<16x384xf32>
    %185 = vector.extract_strided_slice %184 {offsets = [0, 256], sizes = [16, 128], strides = [1, 1]} : vector<16x384xf32> to vector<16x128xf32>
    %c0_81 = arith.constant 0 : index
    %c0_82 = arith.constant 0 : index
    %186 = vector.load %arg19[%c0_81, %c0_82] : memref<1x128xf32, #tpu.memory_space<vmem>>, vector<1x128xf32>
    %187 = vector.broadcast %186 : vector<1x128xf32> to vector<16x128xf32>
    %188 = arith.addf %185, %187 : vector<16x128xf32>
    %189 = vector.extract_strided_slice %184 {offsets = [0, 0], sizes = [16, 128], strides = [1, 1]} : vector<16x384xf32> to vector<16x128xf32>
    %c4_i32_83 = arith.constant 4 : i32
    %190 = tpu.dynamic_rotate %189 by %c4_i32_83 dim 0 : vector<16x128xf32>, i32 -> vector<16x128xf32>
    %c4_i32_84 = arith.constant 4 : i32
    %191 = vector.broadcast %c4_i32_84 : i32 to vector<16x128xi32>
    %192 = arith.cmpi sge, %6, %191 : vector<16x128xi32>
    %cst_85 = arith.constant 0.000000e+00 : f32
    %193 = vector.broadcast %cst_85 : f32 to vector<16x128xf32>
    %194 = arith.select %192, %190, %193 : vector<16x128xi1>, vector<16x128xf32>
    %195 = arith.addf %188, %194 : vector<16x128xf32>
    %196 = vector.extract_strided_slice %184 {offsets = [0, 128], sizes = [16, 128], strides = [1, 1]} : vector<16x384xf32> to vector<16x128xf32>
    %c2_i32_86 = arith.constant 2 : i32
    %197 = tpu.dynamic_rotate %196 by %c2_i32_86 dim 0 : vector<16x128xf32>, i32 -> vector<16x128xf32>
    %c2_i32_87 = arith.constant 2 : i32
    %198 = vector.broadcast %c2_i32_87 : i32 to vector<16x128xi32>
    %199 = arith.cmpi sge, %6, %198 : vector<16x128xi32>
    %cst_88 = arith.constant 0.000000e+00 : f32
    %200 = vector.broadcast %cst_88 : f32 to vector<16x128xf32>
    %201 = arith.select %199, %197, %200 : vector<16x128xi1>, vector<16x128xf32>
    %202 = arith.addf %195, %201 : vector<16x128xf32>
    %cst_89 = arith.constant 0.000000e+00 : f32
    %203 = vector.broadcast %cst_89 : f32 to vector<16x128xf32>
    %204 = arith.maximumf %202, %203 : vector<16x128xf32>
    %205 = arith.addf %204, %110 : vector<16x128xf32>
    %cst_90 = arith.constant 0.000000e+00 : f32
    %206 = vector.broadcast %cst_90 : f32 to vector<16x128xf32>
    %207 = arith.maximumf %205, %206 : vector<16x128xf32>
    %c0_91 = arith.constant 0 : index
    %c0_92 = arith.constant 0 : index
    %c0_93 = arith.constant 0 : index
    %208 = vector.load %arg20[%c0_91, %c0_92, %c0_93] : memref<1x16x128xf32, #tpu.memory_space<vmem>>, vector<1x16x128xf32>
    %209 = vector.shape_cast %208 : vector<1x16x128xf32> to vector<16x128xf32>
    %210 = vector.shape_cast %207 : vector<16x128xf32> to vector<1x16x128xf32>
    tpu.vector_store %arg20[%c0_91, %c0_92, %c0_93], %210 {strides = array<i32>} : memref<1x16x128xf32, #tpu.memory_space<vmem>>, vector<1x16x128xf32>,
    return
  }
  func.func @transform_0(%arg0: i32) -> (i32, i32, i32) {
    %c0_i32 = arith.constant 0 : i32
    %c0_i32_0 = arith.constant 0 : i32
    %c0_i32_1 = arith.constant 0 : i32
    return %arg0, %c0_i32, %c0_i32_0 : i32, i32, i32
  }
  func.func @transform_1(%arg0: i32) -> (i32, i32) {
    %c0_i32 = arith.constant 0 : i32
    %c0_i32_0 = arith.constant 0 : i32
    %c0_i32_1 = arith.constant 0 : i32
    return %c0_i32, %c0_i32_0 : i32, i32
  }
  func.func @transform_2(%arg0: i32) -> (i32, i32) {
    %c0_i32 = arith.constant 0 : i32
    %c0_i32_0 = arith.constant 0 : i32
    %c0_i32_1 = arith.constant 0 : i32
    return %c0_i32, %c0_i32_0 : i32, i32
  }
  func.func @transform_3(%arg0: i32) -> (i32, i32) {
    %c0_i32 = arith.constant 0 : i32
    %c0_i32_0 = arith.constant 0 : i32
    %c0_i32_1 = arith.constant 0 : i32
    return %c0_i32, %c0_i32_0 : i32, i32
  }
  func.func @transform_4(%arg0: i32) -> (i32, i32) {
    %c0_i32 = arith.constant 0 : i32
    %c0_i32_0 = arith.constant 0 : i32
    %c0_i32_1 = arith.constant 0 : i32
    return %c0_i32, %c0_i32_0 : i32, i32
  }
  func.func @transform_5(%arg0: i32) -> (i32, i32) {
    %c0_i32 = arith.constant 0 : i32
    %c0_i32_0 = arith.constant 0 : i32
    %c0_i32_1 = arith.constant 0 : i32
    return %c0_i32, %c0_i32_0 : i32, i32
  }
  func.func @transform_6(%arg0: i32) -> (i32, i32) {
    %c0_i32 = arith.constant 0 : i32
    %c0_i32_0 = arith.constant 0 : i32
    %c0_i32_1 = arith.constant 0 : i32
    return %c0_i32, %c0_i32_0 : i32, i32
  }
  func.func @transform_7(%arg0: i32) -> (i32, i32) {
    %c0_i32 = arith.constant 0 : i32
    %c0_i32_0 = arith.constant 0 : i32
    %c0_i32_1 = arith.constant 0 : i32
    return %c0_i32, %c0_i32_0 : i32, i32
  }
  func.func @transform_8(%arg0: i32) -> (i32, i32) {
    %c0_i32 = arith.constant 0 : i32
    %c0_i32_0 = arith.constant 0 : i32
    %c0_i32_1 = arith.constant 0 : i32
    return %c0_i32, %c0_i32_0 : i32, i32
  }
  func.func @transform_9(%arg0: i32) -> (i32, i32) {
    %c0_i32 = arith.constant 0 : i32
    %c0_i32_0 = arith.constant 0 : i32
    %c0_i32_1 = arith.constant 0 : i32
    return %c0_i32, %c0_i32_0 : i32, i32
  }
  func.func @transform_10(%arg0: i32) -> (i32, i32) {
    %c0_i32 = arith.constant 0 : i32
    %c0_i32_0 = arith.constant 0 : i32
    %c0_i32_1 = arith.constant 0 : i32
    return %c0_i32, %c0_i32_0 : i32, i32
  }
  func.func @transform_11(%arg0: i32) -> (i32, i32) {
    %c0_i32 = arith.constant 0 : i32
    %c0_i32_0 = arith.constant 0 : i32
    %c0_i32_1 = arith.constant 0 : i32
    return %c0_i32, %c0_i32_0 : i32, i32
  }
  func.func @transform_12(%arg0: i32) -> (i32, i32) {
    %c0_i32 = arith.constant 0 : i32
    %c0_i32_0 = arith.constant 0 : i32
    %c0_i32_1 = arith.constant 0 : i32
    return %c0_i32, %c0_i32_0 : i32, i32
  }
  func.func @transform_13(%arg0: i32) -> (i32, i32) {
    %c0_i32 = arith.constant 0 : i32
    %c0_i32_0 = arith.constant 0 : i32
    %c0_i32_1 = arith.constant 0 : i32
    return %c0_i32, %c0_i32_0 : i32, i32
  }
  func.func @transform_14(%arg0: i32) -> (i32, i32) {
    %c0_i32 = arith.constant 0 : i32
    %c0_i32_0 = arith.constant 0 : i32
    %c0_i32_1 = arith.constant 0 : i32
    return %c0_i32, %c0_i32_0 : i32, i32
  }
  func.func @transform_15(%arg0: i32) -> (i32, i32) {
    %c0_i32 = arith.constant 0 : i32
    %c0_i32_0 = arith.constant 0 : i32
    %c0_i32_1 = arith.constant 0 : i32
    return %c0_i32, %c0_i32_0 : i32, i32
  }
  func.func @transform_16(%arg0: i32) -> (i32, i32) {
    %c0_i32 = arith.constant 0 : i32
    %c0_i32_0 = arith.constant 0 : i32
    %c0_i32_1 = arith.constant 0 : i32
    return %c0_i32, %c0_i32_0 : i32, i32
  }
  func.func @transform_17(%arg0: i32) -> (i32, i32) {
    %c0_i32 = arith.constant 0 : i32
    %c0_i32_0 = arith.constant 0 : i32
    %c0_i32_1 = arith.constant 0 : i32
    return %c0_i32, %c0_i32_0 : i32, i32
  }
  func.func @transform_18(%arg0: i32) -> (i32, i32) {
    %c0_i32 = arith.constant 0 : i32
    %c0_i32_0 = arith.constant 0 : i32
    %c0_i32_1 = arith.constant 0 : i32
    return %c0_i32, %c0_i32_0 : i32, i32
  }
  func.func @transform_19(%arg0: i32) -> (i32, i32, i32) {
    %c0_i32 = arith.constant 0 : i32
    %c0_i32_0 = arith.constant 0 : i32
    %c0_i32_1 = arith.constant 0 : i32
    return %arg0, %c0_i32, %c0_i32_0 : i32, i32, i32
  }
}

</mosaic_0001>

<bundles_post_ra>
// kernel: tpu_custom_call.1
= control target key start
LH: loop header
LB: loop body
LE: loop exit
PB: predicated region body
PF: predicated region fallthrough
CT: control target
= control target key end

     0   :  { %s5451_s0 = inlined_call_operand.hbm [shape: f32[2,16,128], index: 0, kind: input, shape index: {}]   ;;  %s5452_s1 = inlined_call_operand.hbm [shape: bf16[128,768], index: 1, kind: input, shape index: {}]   ;;  %s5453_s2 = inlined_call_operand.hbm [shape: f32[1,768], index: 2, kind: input, shape index: {}]   ;;  %s5454_s3 = inlined_call_operand.hbm [shape: bf16[128,128], index: 3, kind: input, shape index: {}]   ;;  %s5455_s4 = inlined_call_operand.vmem [shape: f32[1,128], index: 4, kind: input, shape index: {}]   ;;  %s5456_s5 = inlined_call_operand.hbm [shape: bf16[128,384], index: 5, kind: input, shape index: {}]   ;;  %s5457_s6 = inlined_call_operand.vmem [shape: f32[1,128], index: 6, kind: input, shape index: {}]   ;;  %s5458_s7 = inlined_call_operand.hbm [shape: bf16[128,384], index: 7, kind: input, shape index: {}]   ;;  %s5459_s8 = inlined_call_operand.vmem [shape: f32[1,128], index: 8, kind: input, shape index: {}]   ;;  %s5460_s9 = inlined_call_operand.hbm [shape: bf16[128,128], index: 9, kind: input, shape index: {}]   ;;  %s5461_s10 = inlined_call_operand.vmem [shape: f32[1,128], index: 10, kind: input, shape index: {}]   ;;  %s5462_s11 = inlined_call_operand.hbm [shape: bf16[128,768], index: 11, kind: input, shape index: {}]   ;;  %s5463_s12 = inlined_call_operand.vmem [shape: f32[1,768], index: 12, kind: input, shape index: {}]   ;;  %s5464_s13 = inlined_call_operand.hbm [shape: bf16[128,128], index: 13, kind: input, shape index: {}]   ;;  %s5465_s14 = inlined_call_operand.vmem [shape: f32[1,128], index: 14, kind: input, shape index: {}]   ;;  %s5466_s15 = inlined_call_operand.hbm [shape: bf16[128,384], index: 15, kind: input, shape index: {}]   ;;  %s5467_s16 = inlined_call_operand.vmem [shape: f32[1,128], index: 16, kind: input, shape index: {}]   ;;  %s5468_s17 = inlined_call_operand.hbm [shape: bf16[128,384], index: 17, kind: input, shape index: {}]   ;;  %s5469_s18 = inlined_call_operand.vmem [shape: f32[1,128], index: 18, kind: input, shape index: {}]   ;;  %s5470_s19 = inlined_call_operand.hbm [shape: f32[2,16,128], index: 19, kind: output, shape index: {}]  }
   0x1   :  { %5477 = sst [smem:[#allocation28_spill]] %s5451_s0 }
   0x2   :  { %5478 = sst [smem:[#allocation29_spill]] %s5452_s1 }
   0x3   :  { %5479 = sst [smem:[#allocation30_spill]] %s5453_s2 }
   0x4   :  { %5480 = sst [smem:[#allocation31_spill]] %s5454_s3 }
   0x5   :  { %5481 = sst [smem:[#allocation32_spill]] %s5456_s5 }
   0x6   :  { %5482 = sst [smem:[#allocation33_spill]] %s5457_s6 }
   0x7   :  { %5483 = sst [smem:[#allocation34_spill]] %s5458_s7 }
   0x8   :  { %5484 = sst [smem:[#allocation35_spill]] %s5459_s8 }
   0x9   :  { %5485 = sst [smem:[#allocation36_spill]] %s5461_s10 }
   0xa   :  { %5486 = sst [smem:[#allocation37_spill]] %s5462_s11 }
   0xb   :  { %5487 = sst [smem:[#allocation38_spill]] %s5463_s12 }
   0xc   :  { %5488 = sst [smem:[#allocation39_spill]] %s5465_s14 }
   0xd   :  { %5489 = sst [smem:[#allocation40_spill]] %s5467_s16 }
   0xe   :  { %5490 = sst [smem:[#allocation41_spill]] %s5469_s18 }
   0xf   :  { %5491 = sst [smem:[#allocation42_spill]] %s5470_s19 }
  0x10   :  { %24 = vsyncpa [#allocation3], 0 }
  0x11   :  { %26 = vsyncpa [#allocation3 + $0x1], 0 }
  0x12   :  { %27 = vsyncpa [#allocation6], 0 }
  0x13   :  { %28 = vsyncpa [#allocation9], 0 }
  0x14   :  { %29 = vsyncpa [#allocation12], 0 }
  0x15   :  { %30 = vsyncpa [#allocation15], 0 }
  0x16   :  { %31 = vsyncpa [#allocation18], 0 }
  0x17   :  { %32 = vsyncpa [#allocation4], 0 }
  0x18   :  { %34 = vsyncpa [#allocation4 + $0x1], 0  ;;  %s5076_s0 = smov 0   ;;  %s5078_s30 = smov 0  }
  0x19   :  { %s5080_s20 = smov 0   ;;  %s5082_s21 = smov 0  }
  0x1a LB: > { %s5492_s2 = sld [smem:[#allocation29_spill]]  ;;  %s5100_s24 = sadd.s32 4294967295, %s4953_s21   ;;  %s4953_s21 = sphi %s5082_s21, %s5520_s21   ;;  %s4949_s20 = sphi %s5080_s20, %s5519_s20   ;;  %s4945_s30 = sphi %s5078_s30, %s5518_s30   ;;  %s4941_s0 = sphi %s5076_s0, %s5517_s0  }
  0x1b   : > { %p3221_p0 = scmp.ge.s32.totalorder %s4953_s21, 1  ;;  %p61_p1 = scmp.eq.s32.totalorder %s5100_s24, 0 }
  0x1c   : > { %p475_p2 = scmp.lt.s32.totalorder %s4953_s21, 3  ;;  %s4955_s3 = smov [#allocation5]  }
  0x1d   : > { %s488_s26 = sshll.u32 %s4955_s3, 4  ;;  %s5494_s29 = sld [smem:[#allocation31_spill]]  ;;  %s489_s26 = int_to_ptr.vmem [resolvable:$true] %s488_s26 }
  0x1e   : > { %p5105_p3 = pnand %p3221_p0, %p475_p2  ;;  %s4957_s3 = smov 384  }
  0x1f   : > { %s4958_s18 = smov 24   ;;  %s5473_s16 = smov 64  }
  0x20   : > { %s486_s23 = sshll.u32 %s5492_s2, 4  ;;  %p4384_p4 = pneg %p5105_p3  ;;  %s487_s23 = int_to_ptr.hbm [resolvable:$true] %s486_s23 }
  0x21   : > { %s4956_s2 = smov [#allocation8]   ;;  %s5475_s14 = smov 4  }
  0x22   : > { %p5117_p6 = pnand %p4384_p4, %p61_p1  ;;  %s514_s19 = sshll.u32 %s4956_s2, 4  ;;  %s515_s19 = int_to_ptr.vmem [resolvable:$true] %s514_s19 }
  0x23   : > { %s512_s1 = sshll.u32 %s5494_s29, 4  ;;  %s5496_s7 = sld [smem:[#allocation34_spill]]  ;;  %s513_s1 = int_to_ptr.hbm [resolvable:$true] %s512_s1 }
  0x24   : > { %4387 = dma.hbm_to_vmem [thread:$0]  (!%p5117_p6), %s487_s23, 6144, %s489_s26, [#allocation6], %s4957_s3, %s4957_s3, %s4958_s18  }
  0x25   : > { %4393 = dma.hbm_to_vmem [thread:$0]  (!%p5117_p6), %s513_s1, 1024, %s515_s19, [#allocation9], %s5473_s16, %s5473_s16, %s5475_s14  }
  0x26   : > { %s4961_s2 = smov [#allocation11]   ;;  %s5497_s11 = sld [smem:[#allocation37_spill]] }
  0x27   : > { %s548_s12 = sshll.u32 %s4961_s2, 4  ;;  %s4962_s26 = smov 192   ;;  %s549_s12 = int_to_ptr.vmem [resolvable:$true] %s548_s12 }
  0x28   : > { %s4963_s6 = smov 12   ;;  %s4964_s19 = smov [#allocation14]  }
  0x29   : > { %s546_s29 = sshll.u32 %s5496_s7, 4  ;;  %s582_s1 = sshll.u32 %s4964_s19, 4  ;;  %s547_s29 = int_to_ptr.hbm [resolvable:$true] %s546_s29  ;;  %s583_s1 = int_to_ptr.vmem [resolvable:$true] %s582_s1 }
  0x2a   : > { %4399 = dma.hbm_to_vmem [thread:$0]  (!%p5117_p6), %s547_s29, 3072, %s549_s12, [#allocation12], %s4962_s26, %s4962_s26, %s4963_s6  }
  0x2b   : > { %s614_s2 = sshll.u32 %s5466_s15, 4  ;;  %s5498_s16 = sld [smem:[#allocation30_spill]]  ;;  %s615_s2 = int_to_ptr.hbm [resolvable:$true] %s614_s2 }
  0x2c   : > { %s580_s23 = sshll.u32 %s5497_s11, 4  ;;  %s4965_s7 = smov [#allocation17]   ;;  %s581_s23 = int_to_ptr.hbm [resolvable:$true] %s580_s23 }
  0x2d   : > { %4405 = dma.hbm_to_vmem [thread:$0]  (!%p5117_p6), %s581_s23, 6144, %s583_s1, [#allocation15], %s4957_s3, %s4957_s3, %s4958_s18  }
  0x2e   : > { %s616_s11 = sshll.u32 %s4965_s7, 4  ;;  %s4966_s12 = smov [#allocation7]   ;;  %s617_s11 = int_to_ptr.vmem [resolvable:$true] %s616_s11 }
  0x2f   : > { %4411 = dma.hbm_to_vmem [thread:$0]  (!%p5117_p6), %s615_s2, 3072, %s617_s11, [#allocation18], %s4962_s26, %s4962_s26, %s4963_s6  }
  0x30   : > { %s503_s29 = sshll.u32 %s4966_s12, 4  ;;  %s5499_s5 = sld [smem:[#allocation32_spill]]  ;;  %s504_s29 = int_to_ptr.vmem [resolvable:$true] %s503_s29 }
  0x31   : > { %s501_s14 = sshll.u32 %s5498_s16, 4  ;;  %s563_s3 = sshll.u32 %s5460_s9, 4  ;;  %s502_s14 = int_to_ptr.hbm [resolvable:$true] %s501_s14  ;;  %s564_s3 = int_to_ptr.hbm [resolvable:$true] %s563_s3 }
  0x32   : > { %4390 = dma.hbm_to_vmem [thread:$0]  (!%p5117_p6), %s502_s14, 96, %s504_s29, [#allocation6]  }
  0x33   : > { %s4967_s23 = smov [#allocation10]   ;;  %s4968_s11 = smov [#allocation13]  }
  0x34   : > { %s531_s1 = sshll.u32 %s4967_s23, 4  ;;  %s565_s28 = sshll.u32 %s4968_s11, 4  ;;  %s532_s1 = int_to_ptr.vmem [resolvable:$true] %s531_s1  ;;  %s566_s28 = int_to_ptr.vmem [resolvable:$true] %s565_s28 }
  0x35   : > { %s597_s8 = sshll.u32 %s5464_s13, 4  ;;  %s5500_s10 = smov 4   ;;  %s598_s8 = int_to_ptr.hbm [resolvable:$true] %s597_s8 }
  0x36   : > { %s529_s18 = sshll.u32 %s5499_s5, 4  ;;  %s5501_s12 = smov 64   ;;  %s530_s18 = int_to_ptr.hbm [resolvable:$true] %s529_s18 }
  0x37   : > { %4396 = dma.hbm_to_vmem [thread:$0]  (!%p5117_p6), %s530_s18, 3072, %s532_s1, [#allocation9], %s4962_s26, %s4962_s26, %s4963_s6  }
  0x38   : > { %4402 = dma.hbm_to_vmem [thread:$0]  (!%p5117_p6), %s564_s3, 1024, %s566_s28, [#allocation12], %s5501_s12, %s5501_s12, %s5500_s10  }
  0x39   : > { %s631_s27 = sshll.u32 %s5468_s17, 4  ;;  %s4969_s18 = smov [#allocation16]   ;;  %s632_s27 = int_to_ptr.hbm [resolvable:$true] %s631_s27 }
  0x3a   : > { %s599_s16 = sshll.u32 %s4969_s18, 4  ;;  %s4970_s7 = smov [#allocation19]   ;;  %s600_s16 = int_to_ptr.vmem [resolvable:$true] %s599_s16 }
  0x3b   : > { %4408 = dma.hbm_to_vmem [thread:$0]  (!%p5117_p6), %s598_s8, 1024, %s600_s16, [#allocation15], %s5501_s12, %s5501_s12, %s5500_s10  }
  0x3c   : > { %s633_s3 = sshll.u32 %s4970_s7, 4  ;;  %s3220_s23 = sadd.s32 4294967294, %s4953_s21   ;;  %s634_s3 = int_to_ptr.vmem [resolvable:$true] %s633_s3 }
  0x3d   : > { %4414 = dma.hbm_to_vmem [thread:$0]  (!%p5117_p6), %s632_s27, 3072, %s634_s3, [#allocation18], %s4962_s26, %s4962_s26, %s4963_s6  }
  0x3e   : > { %s5188_s1 = sadd.s32 1, %s4953_s21   ;;  %s47_s28 = sadd.s32 1, %s4949_s20 }
  0x3f   : > { %s44_s11 = ssub.s32 %s4953_s21, %s5188_s1  ;;  %p54_p8 = scmp.ne.s32.totalorder %s4949_s20, %s4945_s30 }
  0x40   : > { %p45_p7 = scmp.eq.s32.totalorder %s44_s11, 0  ;;  %p55_p9 = scmp.eq.s32.totalorder %s4953_s21, 0 }
  0x41   : > { %p60_p10 = scmp.ne.s32.totalorder %s4945_s30, %s4941_s0  ;;  %p462_p13 = scmp.eq.s32.totalorder %s5100_s24, 1 }
  0x42   : > { %s5199_s2 = scalar_select %p45_p7, %s4949_s20, %s47_s28  }
  0x43   : > { %p5201_p11 = por %p55_p9, %p54_p8  ;;  %p5207_p12 = por %p61_p1, %p60_p10 }
  0x44   : > { %p468_p0 = scmp.eq.s32.totalorder %s3220_s23, 1  ;;  %p4433_p2 = scmp.lt.s32.totalorder %s4953_s21, 2 }
  0x45   : > { %s650_s26 = sand.u32 1, %s4949_s20   ;;  %p5214_p4 = por %p462_p13, %p54_p8 }
  0x46   : > { %p5218_p6 = por %p468_p0, %p60_p10  ;;  %s3233_s10 = sshll.u32 %s650_s26, 4 }
  0x47   : > { %s4122_s12 = sshll.u32 %s4953_s21, 4  ;;  %s5506_s27 = sld [smem:[#allocation28_spill]] }
  0x48   : > { %s654_s16 = scalar_lea.vmem [#allocation2], %s3233_s10  ;;  %p5228_p7 = pnand %p4433_p2, %p5201_p11 }
  0x49   : > { %s662_s7 = sshll.u32 %s654_s16, 4  ;;  %s651_s11 = scalar_lea.sflag [#allocation3], %s650_s26  ;;  %s663_s7 = int_to_ptr.vmem [resolvable:$true] %s662_s7 }
  0x4a   : > { %p4841_p9 = pneg %p5228_p7 }
  0x4d   : > { %s659_s18 = scalar_lea.hbm %s5506_s27, %s4122_s12  ;;  %s4844_s29 = scalar_lea.hbm %s5506_s27, 32 }
  0x4e   : > { %s660_s3 = sshll.u32 %s659_s18, 4  ;;  %s661_s3 = int_to_ptr.hbm [resolvable:$true] %s660_s3 }
  0x4f   : > { %s4837_s28 = sshra.s32 %s661_s3, 4  ;;  %s4838_s28 = int_to_ptr.hbm [resolvable:$true] %s4837_s28 }
  0x50   : > { %s4839_s5 = scalar_lea.hbm %s4838_s28, 16  ;;  %p4845_p11 = scmp.lt.s32.totalorder %s4838_s28, %s5506_s27 }
  0x51   : > { %p4840_p8 = scmp.ne.s32.totalorder %s4838_s28, %s4839_s5  ;;  %p4846_p0 = scmp.lt.s32.totalorder %s4844_s29, %s4839_s5 }
  0x53   : > { %p4842_p10 = pnand %p4841_p9, %p4840_p8  ;;  %p4847_p2 = por %p4846_p0, %p4845_p11 }
  0x55   : > { %p4843_p13 = pneg %p4842_p10 }
  0x57   : > { %p4848_p5 = pnand %p4847_p2, %p4843_p13 }
  0x59   : > { %4851 = shalt.err (!%p4848_p5)
}
  0x5a   : > { %s4971_s26 = smov 128   ;;  %s4972_s18 = smov 8  }
  0x5b   : > { %4418 = dma.hbm_to_vmem [thread:$0]  (!%p5228_p7), %s661_s3, 256, %s663_s7, %s651_s11, %s4971_s26, %s4971_s26, %s4972_s18  }
  0x5c   : > { %674 = sbr.rel (%p5105_p3) target bundleno = 2463 (0x99f), region = 96  ;;  %s5245_s16 = sand.u32 (!%p5105_p3), 1, %s4945_s30  }
  0x5d   : > { %s3237_s28 = sshll.u32 (!%p5105_p3), %s5245_s16, 4  ;;  %s677_s5 = scalar_lea.sflag (!%p5105_p3), [#allocation3], %s5245_s16 }
  0x5e   : > { %s5251_s10 = scalar_lea.vmem (!%p5105_p3), [#allocation2], %s3237_s28 }
  0x61   : > { %4912 = dma.done.wait (%p5207_p12), %s677_s5, 256  }
  0x62   : > { %4914 = vsyncadd (%p5207_p12), %s677_s5, 4294967040 }
  0x63   : > { %4916 = dma.done.wait (%p61_p1), [#allocation6], 6240  }
  0x64   : > { %4918 = vsyncadd (%p61_p1), [#allocation6], 4294961056 }
  0x65   : > { %4920 = dma.done.wait (%p61_p1), [#allocation9], 4096  }
  0x66   : > { %4922 = vsyncadd (%p61_p1), [#allocation9], 4294963200 }
  0x67   : > { %4924 = dma.done.wait (%p61_p1), [#allocation12], 4096  }
  0x68   : > { %4926 = vsyncadd (%p61_p1), [#allocation12], 4294963200 }
  0x69   : > { %4928 = dma.done.wait (%p61_p1), [#allocation15], 7168  }
  0x6a   : > { %4930 = vsyncadd (%p61_p1), [#allocation15], 4294960128 }
  0x6b   : > { %4932 = dma.done.wait (%p61_p1), [#allocation18], 6144  }
  0x6c   : > { %4934 = vsyncadd (%p61_p1), [#allocation18], 4294961152  ;;  %v3419_v0 = vld [vmem:[#allocation5 + $0x150] sm:$0xf]  ;;  %v4168_v1 = vld [vmem:[#allocation5 + $0x164] sm:$0xf0] }
  0x6d   : > { %v4165_v2 = vld [vmem:[#allocation5 + $0x154] sm:$0xf]  ;;  %v3420_v3 = vor.u32 %v4168_v1, %v3419_v0  ;;  %v3421_v4 = vld [vmem:[#allocation5 + $0x168] sm:$0xf0]  ;;  %v3395_v5 = vld [vmem:[#allocation5 + $0x120] sm:$0xf] }
  0x6e   : > { %v4162_v6 = vld [vmem:[#allocation5 + $0x134] sm:$0xf0]  ;;  %v3424_v7 = vor.u32 %v4165_v2, %v3421_v4  ;;  %v4159_v8 = vld [vmem:[#allocation5 + $0x124] sm:$0xf]  ;;  %v3397_v9 = vld [vmem:[#allocation5 + $0x138] sm:$0xf0] }
  0x6f   : > { %1101 = vmatpush.bf16.msra.mxu0 %v3420_v3  ;;  %v3396_v10 = vor.u32 %v4162_v6, %v3395_v5  ;;  %v3400_v11 = vor.u32 %v4159_v8, %v3397_v9  ;;  %v3371_v12 = vld [vmem:[#allocation5 + $0xf0] sm:$0xf]  ;;  %v4156_v13 = vld [vmem:[#allocation5 + $0x104] sm:$0xf0]  ;;  %v4153_v14 = vld [vmem:[#allocation5 + $0xf4] sm:$0xf] }
  0x70   : > { %1115 = vmatpush.bf16.msra.mxu1 %v3424_v7  ;;  %v3373_v15 = vld [vmem:[#allocation5 + $0x108] sm:$0xf0]  ;;  %v3372_v16 = vor.u32 %v4156_v13, %v3371_v12  ;;  %v3347_v17 = vld [vmem:[#allocation5 + $0xc0] sm:$0xf]  ;;  %v4150_v18 = vld [vmem:[#allocation5 + $0xd4] sm:$0xf0] }
  0x71   : > { %v3376_v19 = vor.u32 %v4153_v14, %v3373_v15  ;;  %v3427_v20 = vld [vmem:[#allocation5 + $0x158] sm:$0xf]  ;;  %v4169_v21 = vld [vmem:[#allocation5 + $0x16c] sm:$0xf0]  ;;  %v4166_v22 = vld [vmem:[#allocation5 + $0x15c] sm:$0xf]  ;;  %v3348_v29 = vor.u32 %v4150_v18, %v3347_v17 }
  0x72   : > { %v4147_v23 = vld [vmem:[#allocation5 + $0xc4] sm:$0xf]  ;;  %v3349_v24 = vld [vmem:[#allocation5 + $0xd8] sm:$0xf0]  ;;  %v3428_v25 = vor.u32 %v4169_v21, %v3427_v20  ;;  %v3429_v26 = vld [vmem:[#allocation5 + $0x170] sm:$0xf0] }
  0x73   : > { %1102 = vmatpush.bf16.msra.mxu0 %v3396_v10  ;;  %v3432_v27 = vor.u32 %v4166_v22, %v3429_v26  ;;  %v3403_v28 = vld [vmem:[#allocation5 + $0x128] sm:$0xf]  ;;  %v4163_v30 = vld [vmem:[#allocation5 + $0x13c] sm:$0xf0]  ;;  %v4160_v31 = vld [vmem:[#allocation5 + $0x12c] sm:$0xf]  ;;  %v3352_v33 = vor.u32 %v4147_v23, %v3349_v24 }
  0x74   : > { %1116 = vmatpush.bf16.msra.mxu1 %v3400_v11  ;;  %1129 = vmatpush.bf16.msra.mxu2 %v3428_v25  ;;  %v3405_v32 = vld [vmem:[#allocation5 + $0x140] sm:$0xf0]  ;;  %v3323_v34 = vld [vmem:[#allocation5 + $0x90] sm:$0xf]  ;;  %v4144_v35 = vld [vmem:[#allocation5 + $0xa4] sm:$0xf0]  ;;  %v3404_v36 = vor.u32 %v4163_v30, %v3403_v28 }
  0x75   : > { %1143 = vmatpush.bf16.msra.mxu3 %v3432_v27  ;;  %v3408_v37 = vor.u32 %v4160_v31, %v3405_v32  ;;  %v4141_v38 = vld [vmem:[#allocation5 + $0x94] sm:$0xf]  ;;  %v3325_v39 = vld [vmem:[#allocation5 + $0xa8] sm:$0xf0]  ;;  %v3379_v40 = vld [vmem:[#allocation5 + $0xf8] sm:$0xf]  ;;  %v3324_v41 = vor.u32 %v4144_v35, %v3323_v34 }
  0x76   : > { %v4157_v42 = vld [vmem:[#allocation5 + $0x10c] sm:$0xf0]  ;;  %v4154_v43 = vld [vmem:[#allocation5 + $0xfc] sm:$0xf]  ;;  %v3381_v44 = vld [vmem:[#allocation5 + $0x110] sm:$0xf0]  ;;  %v3328_v45 = vor.u32 %v4141_v38, %v3325_v39 }
  0x77   : > { %1103 = vmatpush.bf16.msra.mxu0 %v3372_v16  ;;  %v3299_v46 = vld [vmem:[#allocation5 + $0x60] sm:$0xf]  ;;  %v4138_v47 = vld [vmem:[#allocation5 + $0x74] sm:$0xf0]  ;;  %v3380_v48 = vor.u32 %v4157_v42, %v3379_v40  ;;  %v3384_v49 = vor.u32 %v4154_v43, %v3381_v44  ;;  %v4135_v50 = vld [vmem:[#allocation5 + $0x64] sm:$0xf] }
  0x78   : > { %1117 = vmatpush.bf16.msra.mxu1 %v3376_v19  ;;  %1130 = vmatpush.bf16.msra.mxu2 %v3404_v36  ;;  %v3301_v51 = vld [vmem:[#allocation5 + $0x78] sm:$0xf0]  ;;  %v3355_v52 = vld [vmem:[#allocation5 + $0xc8] sm:$0xf]  ;;  %v4151_v53 = vld [vmem:[#allocation5 + $0xdc] sm:$0xf0]  ;;  %v3300_v55 = vor.u32 %v4138_v47, %v3299_v46 }
  0x79   : > { %1144 = vmatpush.bf16.msra.mxu3 %v3408_v37  ;;  %v4148_v54 = vld [vmem:[#allocation5 + $0xcc] sm:$0xf]  ;;  %v3275_v56 = vld [vmem:[#allocation5 + $0x30] sm:$0xf]  ;;  %v4132_v57 = vld [vmem:[#allocation5 + $0x44] sm:$0xf0]  ;;  %v3356_v58 = vor.u32 %v4151_v53, %v3355_v52  ;;  %v3304_v60 = vor.u32 %v4135_v50, %v3301_v51 }
  0x7a   : > { %v3357_v59 = vld [vmem:[#allocation5 + $0xe0] sm:$0xf0]  ;;  %v4129_v61 = vld [vmem:[#allocation5 + $0x34] sm:$0xf]  ;;  %v3277_v62 = vld [vmem:[#allocation5 + $0x48] sm:$0xf0]  ;;  %v3276_v4 = vor.u32 %v4132_v57, %v3275_v56 }
  0x7b   : > { %1104 = vmatpush.bf16.msra.mxu0 %v3348_v29  ;;  %v3360_v63 = vor.u32 %v4148_v54, %v3357_v59  ;;  %v3331_v0 = vld [vmem:[#allocation5 + $0x98] sm:$0xf]  ;;  %v4145_v1 = vld [vmem:[#allocation5 + $0xac] sm:$0xf0]  ;;  %v4142_v2 = vld [vmem:[#allocation5 + $0x9c] sm:$0xf]  ;;  %v3280_v9 = vor.u32 %v4129_v61, %v3277_v62 }
  0x7c   : > { %1118 = vmatpush.bf16.msra.mxu1 %v3352_v33  ;;  %1131 = vmatpush.bf16.msra.mxu2 %v3380_v48  ;;  %v3333_v3 = vld [vmem:[#allocation5 + $0xb0] sm:$0xf0]  ;;  %v3251_v5 = vld [vmem:[#allocation5] sm:$0xf]  ;;  %v4126_v6 = vld [vmem:[#allocation5 + $0x14] sm:$0xf0]  ;;  %v3332_v8 = vor.u32 %v4145_v1, %v3331_v0 }
  0x7d   : > { %1145 = vmatpush.bf16.msra.mxu3 %v3384_v49  ;;  %v4123_v7 = vld [vmem:[#allocation5 + $0x4] sm:$0xf]  ;;  %v3253_v10 = vld [vmem:[#allocation5 + $0x18] sm:$0xf0]  ;;  %v3336_v11 = vor.u32 %v4142_v2, %v3333_v3  ;;  %v3307_v12 = vld [vmem:[#allocation5 + $0x68] sm:$0xf]  ;;  %v3252_v20 = vor.u32 %v4126_v6, %v3251_v5 }
  0x7e   : > { %v4139_v13 = vld [vmem:[#allocation5 + $0x7c] sm:$0xf0]  ;;  %v4170_v15 = vld [vmem:[#allocation5 + $0x174] sm:$0xf0]  ;;  %v4167_v16 = vld [vmem:[#allocation5 + $0x164] sm:$0xf]  ;;  %v3256_v24 = vor.u32 %v4123_v7, %v3253_v10 }
  0x7f   : > { %1105 = vmatpush.bf16.msra.mxu0 %v3324_v41  ;;  %v3435_v14 = vld [vmem:[#allocation5 + $0x160] sm:$0xf]  ;;  %v3437_v17 = vld [vmem:[#allocation5 + $0x178] sm:$0xf0]  ;;  %v4136_v18 = vld [vmem:[#allocation5 + $0x6c] sm:$0xf]  ;;  %v3308_v23 = vor.u32 %v4139_v13, %v3307_v12 }
  0x80   : > { %1119 = vmatpush.bf16.msra.mxu1 %v3328_v45  ;;  %1132 = vmatpush.bf16.msra.mxu2 %v3356_v58  ;;  %v3309_v19 = vld [vmem:[#allocation5 + $0x80] sm:$0xf0]  ;;  %v797_v22 = vld [vmem:[%s5251_s10 + $0x8] sm:$0xff]  ;;  %v3436_v25 = vor.u32 %v4170_v15, %v3435_v14  ;;  %v4133_v27 = vld [vmem:[#allocation5 + $0x4c] sm:$0xf0]  ;;  %v3440_v28 = vor.u32 %v4167_v16, %v3437_v17  ;;  %vm1215_vm1 = vcmask 130048  }
  0x81   : > { %1146 = vmatpush.bf16.msra.mxu3 %v3360_v63  ;;  %v796_v21 = vld [vmem:[%s5251_s10] sm:$0xff]  ;;  %v3283_v26 = vld [vmem:[#allocation5 + $0x38] sm:$0xf]  ;;  %v4164_v30 = vld [vmem:[#allocation5 + $0x144] sm:$0xf0]  ;;  %v3312_v32 = vor.u32 %v4136_v18, %v3309_v19  ;;  %s5508_s23 = sld [smem:[#allocation33_spill]] }
  0x82   : > { %v3411_v29 = vld [vmem:[#allocation5 + $0x130] sm:$0xf]  ;;  %v4161_v31 = vld [vmem:[#allocation5 + $0x134] sm:$0xf]  ;;  %v5279_v33 = vpack.c.bf16 %v797_v22, %v796_v21  ;;  %v3413_v34 = vld [vmem:[#allocation5 + $0x148] sm:$0xf0]  ;;  %v3284_v39 = vor.u32 %v4133_v27, %v3283_v26 }
  0x83   : > { %1106 = vmatpush.bf16.msra.mxu0 %v3300_v55  ;;  %v4130_v35 = vld [vmem:[#allocation5 + $0x3c] sm:$0xf]  ;;  %v3285_v36 = vld [vmem:[#allocation5 + $0x50] sm:$0xf0]  ;;  %v3387_v37 = vld [vmem:[#allocation5 + $0x100] sm:$0xf]  ;;  %v3412_v40 = vor.u32 %v4164_v30, %v3411_v29  ;;  %v3416_v46 = vor.u32 %v4161_v31, %v3413_v34 }
  0x84   : > { %1120 = vmatpush.bf16.msra.mxu1 %v3304_v60  ;;  %1133 = vmatpush.bf16.msra.mxu2 %v3332_v8  ;;  %v4158_v38 = vld [vmem:[#allocation5 + $0x114] sm:$0xf0]  ;;  %v4155_v41 = vld [vmem:[#allocation5 + $0x104] sm:$0xf]  ;;  %v3389_v42 = vld [vmem:[#allocation5 + $0x118] sm:$0xf0]  ;;  %v3288_v47 = vor.u32 %v4130_v35, %v3285_v36 }
  0x85   : > { %1147 = vmatpush.bf16.msra.mxu3 %v3336_v11  ;;  %v3259_v43 = vld [vmem:[#allocation5 + $0x8] sm:$0xf]  ;;  %v4127_v44 = vld [vmem:[#allocation5 + $0x1c] sm:$0xf0]  ;;  %v4124_v45 = vld [vmem:[#allocation5 + $0xc] sm:$0xf]  ;;  %v3388_v50 = vor.u32 %v4158_v38, %v3387_v37  ;;  %v3392_v51 = vor.u32 %v4155_v41, %v3389_v42 }
  0x86   : > { %v3261_v48 = vld [vmem:[#allocation5 + $0x20] sm:$0xf0]  ;;  %v3260_v49 = vor.u32 %v4127_v44, %v3259_v43  ;;  %v3363_v52 = vld [vmem:[#allocation5 + $0xd0] sm:$0xf]  ;;  %v4152_v53 = vld [vmem:[#allocation5 + $0xe4] sm:$0xf0] }
  0x87   : > { %1107 = vmatpush.bf16.msra.mxu0 %v3276_v4  ;;  %v3264_v54 = vor.u32 %v4124_v45, %v3261_v48  ;;  %v4149_v55 = vld [vmem:[#allocation5 + $0xd4] sm:$0xf]  ;;  %v3365_v56 = vld [vmem:[#allocation5 + $0xe8] sm:$0xf0]  ;;  %v3364_v57 = vor.u32 %v4152_v53, %v3363_v52  ;;  %v3339_v59 = vld [vmem:[#allocation5 + $0xa0] sm:$0xf] }
  0x88   : > { %1121 = vmatpush.bf16.msra.mxu1 %v3280_v9  ;;  %1134 = vmatpush.bf16.msra.mxu2 %v3308_v23  ;;  %v3368_v58 = vor.u32 %v4149_v55, %v3365_v56  ;;  %v4146_v60 = vld [vmem:[#allocation5 + $0xb4] sm:$0xf0]  ;;  %v4143_v61 = vld [vmem:[#allocation5 + $0xa4] sm:$0xf]  ;;  %v3341_v62 = vld [vmem:[#allocation5 + $0xb8] sm:$0xf0] }
  0x89   : > { %1148 = vmatpush.bf16.msra.mxu3 %v3312_v32  ;;  %v3340_v63 = vor.u32 %v4146_v60, %v3339_v59  ;;  %v3344_v0 = vor.u32 %v4143_v61, %v3341_v62  ;;  %v3315_v1 = vld [vmem:[#allocation5 + $0x70] sm:$0xf]  ;;  %v4140_v2 = vld [vmem:[#allocation5 + $0x84] sm:$0xf0]  ;;  %v4137_v3 = vld [vmem:[#allocation5 + $0x74] sm:$0xf] }
  0x8a   : > { %v3317_v4 = vld [vmem:[#allocation5 + $0x88] sm:$0xf0]  ;;  %v3316_v5 = vor.u32 %v4140_v2, %v3315_v1  ;;  %v3291_v7 = vld [vmem:[#allocation5 + $0x40] sm:$0xf]  ;;  %v4134_v8 = vld [vmem:[#allocation5 + $0x54] sm:$0xf0] }
  0x8b   : > { %1108 = vmatpush.bf16.msra.mxu0 %v3252_v20  ;;  %v3320_v6 = vor.u32 %v4137_v3, %v3317_v4  ;;  %v4131_v9 = vld [vmem:[#allocation5 + $0x44] sm:$0xf]  ;;  %v3293_v10 = vld [vmem:[#allocation5 + $0x58] sm:$0xf0]  ;;  %v3292_v11 = vor.u32 %v4134_v8, %v3291_v7  ;;  %v3267_v13 = vld [vmem:[#allocation5 + $0x10] sm:$0xf] }
  0x8c   : > { %1122 = vmatpush.bf16.msra.mxu1 %v3256_v24  ;;  %1135 = vmatpush.bf16.msra.mxu2 %v3284_v39  ;;  %v3296_v12 = vor.u32 %v4131_v9, %v3293_v10  ;;  %v4128_v14 = vld [vmem:[#allocation5 + $0x24] sm:$0xf0]  ;;  %v4125_v15 = vld [vmem:[#allocation5 + $0x14] sm:$0xf]  ;;  %v3269_v16 = vld [vmem:[#allocation5 + $0x28] sm:$0xf0] }
  0x8d   : > { %1149 = vmatpush.bf16.msra.mxu3 %v3288_v47  ;;  %v3268_v17 = vor.u32 %v4128_v14, %v3267_v13  ;;  %v3272_v18 = vor.u32 %v4125_v15, %v3269_v16  ;;  %v847_v19 = vld [vmem:[#allocation7] sm:$0x3f]  ;;  %v4973_v14 = vmov -1e+30   ;;  %s5509_s29 = sld [smem:[#allocation35_spill]]  ;;  %s4339_s22 = sshll.u32 %s5100_s24, 4 }
  0x8e   : > { %1109 = vmatmul.bf16.vlgmr.msra.gmra.mxu0 %v5279_v33  ;;  %v849_v20 = vperm.slane %v847_v19, 0  ;;  %v850_v22 = vperm.slane %v847_v19, 1  ;;  %v851_v42 = vperm.slane %v847_v19, 2  ;;  %v852_v43 = vperm.slane %v847_v19, 3  ;;  %s5510_s26 = sld [smem:[#allocation36_spill]]  ;;  %s785_s24 = scalar_lea.vmem [#allocation20], %s3237_s28 }
  0x8f   : > { %1157 = vmatpush.bf16.msrb.mxu0 %v3436_v25  ;;  %1123 = vmatmul.bf16.vlgmr.msra.gmra.mxu1 %v5279_v33  ;;  %v853_v45 = vperm.slane %v847_v19, 4  ;;  %s5511_s10 = sld [smem:[#allocation38_spill]]  ;;  %s3049_s25 = sshll.u32 %s785_s24, 4  ;;  %s3050_s25 = int_to_ptr.vmem [resolvable:$true] %s3049_s25 }
  0x90   : > { %1171 = vmatpush.bf16.msrb.mxu1 %v3440_v28  ;;  %1136 = vmatpush.bf16.msra.mxu2 %v3260_v49  ;;  %s5512_s7 = sld [smem:[#allocation39_spill]] }
  0x91   : > { %1150 = vmatpush.bf16.msra.mxu3 %v3264_v54  ;;  %s5513_s11 = sld [smem:[#allocation40_spill]] }
  0x92   : > { %s5514_s19 = sld [smem:[#allocation41_spill]] }
  0x93   : > { %1158 = vmatpush.bf16.msrb.mxu0 %v3412_v40  ;;  %1137 = vmatmul.bf16.vlgmr.msra.gmra.mxu2 %v5279_v33  ;;  %s5515_s5 = sld [smem:[#allocation42_spill]] }
  0x94   : > { %1172 = vmatpush.bf16.msrb.mxu1 %v3416_v46  ;;  %1151 = vmatmul.bf16.vlgmr.msra.gmra.mxu3 %v5279_v33  ;;  %v854_v46 = vperm.slane %v847_v19, 5 }
  0x97   : > { %1159 = vmatpush.bf16.msrb.mxu0 %v3388_v50 }
  0x98   : > { %1173 = vmatpush.bf16.msrb.mxu1 %v3392_v51 }
  0x99   : > { %s4887_s12 = scalar_lea.hbm %s5515_s5, 32 }
  0x9b   : > { %1160 = vmatpush.bf16.msrb.mxu0 %v3364_v57 }
  0x9c   : > { %1174 = vmatpush.bf16.msrb.mxu1 %v3368_v58 }
  0x9f   : > { %1161 = vmatpush.bf16.msrb.mxu0 %v3340_v63 }
  0xa0   : > { %1175 = vmatpush.bf16.msrb.mxu1 %v3344_v0 }
  0xa3   : > { %1162 = vmatpush.bf16.msrb.mxu0 %v3316_v5 }
  0xa4   : > { %1176 = vmatpush.bf16.msrb.mxu1 %v3320_v6 }
  0xa7   : > { %1163 = vmatpush.bf16.msrb.mxu0 %v3292_v11  ;;  %v787_v11 = vlaneseq }
  0xa8   : > { %1177 = vmatpush.bf16.msrb.mxu1 %v3296_v12 }
  0xa9   : > { %v5287_v12 = vshrl.u32 %v787_v11, 7  ;;  %v791_v13 = vand.u32 127, %v787_v11  ;;  %v4200_v11 = vld [vmem:[#allocation10 + $0xac] sm:$0xf] }
  0xab   : > { %1164 = vmatpush.bf16.msrb.mxu0 %v3268_v17  ;;  %vm792_vm0 = vcmp.le.s32.totalorder %v791_v13, %v5287_v12  ;;  %v789_v16 = vadd.s32 8, %v5287_v12  ;;  %vm1624_vm3 = vcmp.lt.s32.totalorder %v5287_v12, 2  ;;  %vm1627_vm4 = vcmp.ge.s32.totalorder %v5287_v12, 2 }
  0xac   : > { %1178 = vmatpush.bf16.msrb.mxu1 %v3272_v18  ;;  %v5290_v15 = vsel %vm792_vm0, 0.0, %v4973_v14  ;;  %vm1635_vm5 = vcmp.lt.s32.totalorder %v5287_v12, 1  ;;  %vm1638_vm6 = vcmp.ge.s32.totalorder %v5287_v12, 1  ;;  %vm2784_vm7 = vcmp.lt.s32.totalorder %v5287_v12, 4 }
  0xad   : > { %vm793_vm2 = vcmp.le.s32.totalorder %v791_v13, %v789_v16  ;;  %v3569_v16 = vld [vmem:[#allocation10 + $0xb0] sm:$0xf]  ;;  %vm2787_vm8 = vcmp.ge.s32.totalorder %v5287_v12, 4 }
  0xae   : > { %1165 = vmatmul.bf16.vlgmr.msrb.gmra.mxu0 %v5279_v33 }
  0xaf   : > { %1179 = vmatmul.bf16.vlgmr.msrb.gmra.mxu1 %v5279_v33 }
 0x10b   : > { %v1110_v21 = vpop.f32.mrf.mxu0 }
 0x10c   : > { %v1124_v23 = vpop.f32.mrf.mxu1  ;;  %v1111_v24 = vadd.f32 %v1110_v21, %v849_v20 }
 0x10d   : > { %v1125_v25 = vadd.f32 %v1124_v23, %v850_v22 }
 0x10f   : > { %v1185_v26 = vpack.c.bf16 %v1125_v25, %v1111_v24 }
 0x111   : > { %v1197_v32 = vunpack.c.h.b16 %v1185_v26  ;;  %v1193_v36 = vunpack.c.l.b16 %v1185_v26 }
 0x113   : > { %v1112_v27 = vpop.f32.mrf.mxu0 }
 0x114   : > { %v1113_v28 = vadd.f32 %v1112_v27, %v849_v20  ;;  %v1126_v29 = vpop.f32.mrf.mxu1  ;;  %v5295_v20 = vsel %vm793_vm2, 0.0, %v4973_v14  ;;  %v3563_v14 = vld [vmem:[#allocation10 + $0xb4] sm:$0xf0] }
 0x115   : > { %v1127_v30 = vadd.f32 %v1126_v29, %v850_v22 }
 0x116   : > { %v1138_v38 = vpop.f32.mrf.mxu2 }
 0x117   : > { %v1188_v31 = vpack.c.bf16 %v1127_v30, %v1113_v28  ;;  %v1152_v39 = vpop.f32.mrf.mxu3  ;;  %v1139_v49 = vadd.f32 %v1138_v38, %v851_v42 }
 0x118   : > { %v1153_v50 = vadd.f32 %v1152_v39, %v852_v43 }
 0x119   : > { %v1198_v34 = vunpack.c.h.b16 %v1188_v31  ;;  %v1194_v37 = vunpack.c.l.b16 %v1188_v31 }
 0x11a   : > { %v1186_v56 = vpack.c.bf16 %v1153_v50, %v1139_v49 }
 0x11b   : > { %v1199_v35 = vpack.c.b16 %v1198_v34, %v1197_v32  ;;  %v1195_v40 = vpack.c.b16 %v1194_v37, %v1193_v36 }
 0x11c   : > { %v1309_v63 = vunpack.c.l.b16 %v1186_v56  ;;  %v1241_v8 = vunpack.c.h.b16 %v1186_v56 }
 0x11d   : > { %1208 = vmatpush.bf16.xpose.msrb.mxu2 %v1199_v35 }
 0x11e   : > { %v1140_v47 = vpop.f32.mrf.mxu2 }
 0x11f   : > { %v1154_v48 = vpop.f32.mrf.mxu3  ;;  %v1141_v51 = vadd.f32 %v1140_v47, %v851_v42 }
 0x120   : > { %v1155_v52 = vadd.f32 %v1154_v48, %v852_v43 }
 0x122   : > { %v1189_v57 = vpack.c.bf16 %v1155_v52, %v1141_v51 }
 0x124   : > { %1209 = vmatmul.bf16.vlgmr.msrb.gmra.mxu2 %v1195_v40  ;;  %v1310_v0 = vunpack.c.l.b16 %v1189_v57  ;;  %v1242_v9 = vunpack.c.h.b16 %v1189_v57 }
 0x126   : > { %v1311_v7 = vpack.c.b16 %v1310_v0, %v1309_v63  ;;  %v1243_v10 = vpack.c.b16 %v1242_v9, %v1241_v8  ;;  %v4171_v8 = vld [vmem:[#allocation8] sm:$0xff]  ;;  %v3561_v9 = vld [vmem:[#allocation10 + $0xa8] sm:$0xf] }
 0x12b   : > { %v1166_v41 = vpop.f32.mrf.mxu0 }
 0x12c   : > { %v1180_v44 = vpop.f32.mrf.mxu1  ;;  %v1167_v53 = vadd.f32 %v1166_v41, %v853_v45 }
 0x12d   : > { %v1181_v54 = vadd.f32 %v1180_v44, %v854_v46 }
 0x12f   : > { %v1187_v60 = vpack.c.bf16 %v1181_v54, %v1167_v53 }
 0x131   : > { %v1288_v1 = vunpack.c.h.b16 %v1187_v60  ;;  %v1247_v3 = vunpack.c.l.b16 %v1187_v60 }
 0x133   : > { %v1168_v55 = vpop.f32.mrf.mxu0 }
 0x134   : > { %v1169_v58 = vadd.f32 %v1168_v55, %v853_v45  ;;  %v1182_v59 = vpop.f32.mrf.mxu1 }
 0x135   : > { %v1183_v61 = vadd.f32 %v1182_v59, %v854_v46 }
 0x137   : > { %v1190_v62 = vpack.c.bf16 %v1183_v61, %v1169_v58 }
 0x139   : > { %v1289_v2 = vunpack.c.h.b16 %v1190_v62  ;;  %v1248_v4 = vunpack.c.l.b16 %v1190_v62 }
 0x13b   : > { %v1290_v5 = vpack.c.b16 %v1289_v2, %v1288_v1  ;;  %v1249_v6 = vpack.c.b16 %v1248_v4, %v1247_v3  ;;  %v4178_v1 = vld [vmem:[#allocation8 + $0x38] sm:$0xff]  ;;  %v4177_v2 = vld [vmem:[#allocation8 + $0x30] sm:$0xff]  ;;  %v4176_v3 = vld [vmem:[#allocation8 + $0x28] sm:$0xff] }
 0x13c   : > { %1399 = vmatpush.bf16.msra.mxu0 %v4178_v1  ;;  %v4175_v4 = vld [vmem:[#allocation8 + $0x20] sm:$0xff]  ;;  %v3501_v1 = vld [vmem:[#allocation10 + $0x30] sm:$0xf] }
 0x13d   : > { %1258 = vmatpush.bf16.xpose.msrb.mxu3 %v1249_v6  ;;  %1302 = vmatpush.bf16.msra.mxu2 %v1290_v5  ;;  %v4174_v5 = vld [vmem:[#allocation8 + $0x18] sm:$0xff]  ;;  %v4173_v6 = vld [vmem:[#allocation8 + $0x10] sm:$0xff] }
 0x140   : > { %1400 = vmatpush.bf16.msra.mxu0 %v4177_v2  ;;  %v4186_v2 = vld [vmem:[#allocation10 + $0x38] sm:$0xf0] }
 0x144   : > { %1259 = vmatmul.bf16.vlgmr.msrb.gmra.mxu3 %v1243_v10  ;;  %1401 = vmatpush.bf16.msra.mxu0 %v4176_v3  ;;  %v4201_v10 = vld [vmem:[#allocation10 + $0xb0] sm:$0xf0] }
 0x145   : > { %1323 = vmatpush.bf16.msra.mxu3 %v1311_v7  ;;  %v4172_v7 = vld [vmem:[#allocation8 + $0x8] sm:$0xff]  ;;  %v3562_v13 = vor.u32 %v4201_v10, %v3561_v9  ;;  %v4185_v3 = vld [vmem:[#allocation10 + $0x34] sm:$0xf]  ;;  %v3489_v10 = vld [vmem:[#allocation10 + $0x18] sm:$0xf] }
 0x147   : > { %1574 = vmatpush.bf16.msra.mxu1 %v3562_v13  ;;  %v4182_v13 = vld [vmem:[#allocation10 + $0x1c] sm:$0xf] }
 0x148   : > { %1402 = vmatpush.bf16.msra.mxu0 %v4175_v4  ;;  %v3502_v4 = vor.u32 %v4186_v2, %v3501_v1  ;;  %v4220_v1 = vld [vmem:[#allocation11 + $0x88] sm:$0xf0] }
 0x14c   : > { %1403 = vmatpush.bf16.msra.mxu0 %v4174_v5  ;;  %v3503_v5 = vld [vmem:[#allocation10 + $0x3c] sm:$0xf0] }
 0x150   : > { %1404 = vmatpush.bf16.msra.mxu0 %v4173_v6  ;;  %v3509_v6 = vld [vmem:[#allocation10 + $0x38] sm:$0xf] }
 0x154   : > { %1405 = vmatpush.bf16.msra.mxu0 %v4172_v7  ;;  %v4187_v7 = vld [vmem:[#allocation10 + $0x40] sm:$0xf0] }
 0x155   : > { %v3510_v9 = vor.u32 %v4187_v7, %v3509_v6  ;;  %v4216_v6 = vld [vmem:[#allocation11 + $0x68] sm:$0xf0]  ;;  %v4215_v7 = vld [vmem:[#allocation11 + $0x64] sm:$0xf] }
 0x158   : > { %1406 = vmatpush.bf16.msra.mxu0 %v4171_v8  ;;  %v3506_v8 = vor.u32 %v4185_v3, %v3503_v5  ;;  %v3621_v5 = vld [vmem:[#allocation11 + $0x60] sm:$0xf] }
 0x1a7   : > { %v1210_v17 = vpop.f32.mrf.mxu2 }
 0x1a8   : > { %v1211_v18 = vadd.f32 %v1210_v17, %v5290_v15  ;;  %v4202_v17 = vld [vmem:[#allocation10 + $0xb8] sm:$0xf0] }
 0x1aa   : > { %v1216_v19 = vsel %vm1215_vm1, %v1211_v18, -inf }
 0x1ab   : > { %1217 = vmax.xlane.f32.xlu0 %v1216_v19  ;;  %v3570_v19 = vor.u32 %v4202_v17, %v3569_v16  ;;  %v3491_v16 = vld [vmem:[#allocation10 + $0x24] sm:$0xf0]  ;;  %v3497_v17 = vld [vmem:[#allocation10 + $0x20] sm:$0xf] }
 0x1ad   : > { %1602 = vmatpush.bf16.msrb.mxu3 %v3570_v19  ;;  %v3494_v19 = vor.u32 %v4182_v13, %v3491_v16  ;;  %v4230_v16 = vld [vmem:[#allocation13 + $0x18] sm:$0xff] }
 0x1af   : > { %v1212_v21 = vpop.f32.mrf.mxu2 }
 0x1b0   : > { %v1213_v22 = vadd.f32 %v1212_v21, %v5295_v20  ;;  %v3549_v21 = vld [vmem:[#allocation10 + $0x90] sm:$0xf] }
 0x1b2   : > { %v1219_v23 = vsel %vm1215_vm1, %v1213_v22, -inf }
 0x1b3   : > { %1220 = vmax.xlane.f32.xlu0 %v1219_v23  ;;  %v4197_v23 = vld [vmem:[#allocation10 + $0x94] sm:$0xf] }
 0x1c7   : > { %v1260_v24 = vpop.f32.mrf.mxu3 }
 0x1c8   : > { %v1261_v25 = vadd.f32 %v1260_v24, %v5290_v15 }
 0x1ca   : > { %v1265_v26 = vsel %vm1215_vm1, %v1261_v25, -inf }
 0x1cb   : > { %1266 = vmax.xlane.f32.xlu1 %v1265_v26  ;;  %v3557_v26 = vld [vmem:[#allocation10 + $0x98] sm:$0xf] }
 0x1cf   : > { %v1262_v27 = vpop.f32.mrf.mxu3 }
 0x1d0   : > { %v1263_v28 = vadd.f32 %v1262_v27, %v5295_v20  ;;  %v4199_v27 = vld [vmem:[#allocation10 + $0xa0] sm:$0xf0] }
 0x1d2   : > { %v1268_v29 = vsel %vm1215_vm1, %v1263_v28, -inf }
 0x1d3   : > { %1269 = vmax.xlane.f32.xlu1 %v1268_v29  ;;  %v3558_v29 = vor.u32 %v4199_v27, %v3557_v26  ;;  %v3479_v26 = vld [vmem:[#allocation10 + $0xc] sm:$0xf0]  ;;  %v3485_v27 = vld [vmem:[#allocation10 + $0x8] sm:$0xf] }
 0x1d5   : > { %1603 = vmatpush.bf16.msrb.mxu3 %v3558_v29 }
 0x21e   : > { %v1218_v30 = vpop.xlane.xlu0 %1217 }
 0x21f   : > { %v1222_v31 = vsub.f32 %v1211_v18, %v1218_v30  ;;  %v3566_v18 = vor.u32 %v4200_v11, %v3563_v14  ;;  %v3537_v30 = vld [vmem:[#allocation10 + $0x78] sm:$0xf]  ;;  %v4183_v11 = vld [vmem:[#allocation10 + $0x20] sm:$0xf0] }
 0x220   : > { %v3490_v14 = vor.u32 %v4183_v11, %v3489_v10  ;;  %v3629_v10 = vld [vmem:[#allocation11 + $0x68] sm:$0xf]  ;;  %v4217_v11 = vld [vmem:[#allocation11 + $0x70] sm:$0xf0] }
 0x221   : > { %v1224_v32 = vmul.f32 1.442695, %v1222_v31  ;;  %1588 = vmatpush.bf16.msrb.mxu2 %v3566_v18  ;;  %v4195_v31 = vld [vmem:[#allocation10 + $0x80] sm:$0xf0]  ;;  %v4184_v18 = vld [vmem:[#allocation10 + $0x28] sm:$0xf0] }
 0x223   : > { %4505 = vpow2.f32 %v1224_v32  ;;  %v4194_v32 = vld [vmem:[#allocation10 + $0x7c] sm:$0xf] }
 0x226   : > { %v1221_v34 = vpop.xlane.xlu0 %1220 }
 0x227   : > { %v1223_v35 = vsub.f32 %v1213_v22, %v1221_v34  ;;  %v4198_v22 = vld [vmem:[#allocation10 + $0x98] sm:$0xf0]  ;;  %v3539_v34 = vld [vmem:[#allocation10 + $0x84] sm:$0xf0] }
 0x228   : > { %v3550_v24 = vor.u32 %v4198_v22, %v3549_v21  ;;  %v3498_v21 = vor.u32 %v4184_v18, %v3497_v17  ;;  %v3477_v22 = vld [vmem:[#allocation10] sm:$0xf]  ;;  %v3609_v17 = vld [vmem:[#allocation11 + $0x48] sm:$0xf]  ;;  %v4213_v18 = vld [vmem:[#allocation11 + $0x50] sm:$0xf0] }
 0x229   : > { %v4506_v36 = vpop.eup %4505  ;;  %v1226_v37 = vmul.f32 1.442695, %v1223_v35  ;;  %v3545_v35 = vld [vmem:[#allocation10 + $0x80] sm:$0xf] }
 0x22a   : > { %v1228_v38 = vsel %vm1215_vm1, %v4506_v36, 0.0  ;;  %1575 = vmatpush.bf16.msra.mxu1 %v3550_v24  ;;  %v4179_v24 = vld [vmem:[#allocation10 + $0x4] sm:$0xf] }
 0x22b   : > { %4507 = vpow2.f32 %v1226_v37  ;;  %1229 = vadd.xlane.f32.xlu2 %v1228_v38  ;;  %v3538_v37 = vor.u32 %v4195_v31, %v3537_v30  ;;  %v3542_v38 = vor.u32 %v4194_v32, %v3539_v34  ;;  %v3482_v29 = vor.u32 %v4179_v24, %v3479_v26  ;;  %v4234_v31 = vld [vmem:[#allocation13 + $0x38] sm:$0xff]  ;;  %v3657_v32 = vld [vmem:[#allocation11 + $0xa8] sm:$0xf]  ;;  %v4225_v34 = vld [vmem:[#allocation11 + $0xb0] sm:$0xf0] }
 0x22e   : > { %1576 = vmatpush.bf16.msra.mxu1 %v3538_v37  ;;  %v3659_v37 = vld [vmem:[#allocation11 + $0xb4] sm:$0xf0] }
 0x231   : > { %v4508_v39 = vpop.eup %4507 }
 0x232   : > { %v1231_v40 = vsel %vm1215_vm1, %v4508_v39, 0.0 }
 0x233   : > { %1232 = vadd.xlane.f32.xlu2 %v1231_v40  ;;  %v3525_v40 = vld [vmem:[#allocation10 + $0x60] sm:$0xf] }
 0x23e   : > { %v1267_v41 = vpop.xlane.xlu1 %1266 }
 0x23f   : > { %v1271_v42 = vsub.f32 %v1261_v25, %v1267_v41  ;;  %v3551_v25 = vld [vmem:[#allocation10 + $0x9c] sm:$0xf0]  ;;  %v4192_v41 = vld [vmem:[#allocation10 + $0x68] sm:$0xf0] }
 0x241   : > { %v1273_v43 = vmul.f32 1.442695, %v1271_v42  ;;  %v4191_v42 = vld [vmem:[#allocation10 + $0x64] sm:$0xf] }
 0x243   : > { %4509 = vpow2.f32 %v1273_v43  ;;  %v3527_v43 = vld [vmem:[#allocation10 + $0x6c] sm:$0xf0] }
 0x246   : > { %v1270_v44 = vpop.xlane.xlu1 %1269 }
 0x247   : > { %v1272_v45 = vsub.f32 %v1263_v28, %v1270_v44  ;;  %v3554_v28 = vor.u32 %v4197_v23, %v3551_v25  ;;  %v3533_v44 = vld [vmem:[#allocation10 + $0x68] sm:$0xf]  ;;  %v4180_v23 = vld [vmem:[#allocation10 + $0x8] sm:$0xf0] }
 0x248   : > { %v3478_v25 = vor.u32 %v4180_v23, %v3477_v22  ;;  %v3611_v22 = vld [vmem:[#allocation11 + $0x54] sm:$0xf0]  ;;  %v3617_v23 = vld [vmem:[#allocation11 + $0x50] sm:$0xf] }
 0x249   : > { %v4510_v46 = vpop.eup %4509  ;;  %v1275_v47 = vmul.f32 1.442695, %v1272_v45  ;;  %1589 = vmatpush.bf16.msrb.mxu2 %v3554_v28  ;;  %v4193_v45 = vld [vmem:[#allocation10 + $0x70] sm:$0xf0] }
 0x24a   : > { %v1277_v48 = vsel %vm1215_vm1, %v4510_v46, 0.0  ;;  %v4181_v28 = vld [vmem:[#allocation10 + $0x10] sm:$0xf0] }
 0x24b   : > { %4511 = vpow2.f32 %v1275_v47  ;;  %1278 = vadd.xlane.f32.xlu0 %v1277_v48  ;;  %v3530_v47 = vor.u32 %v4191_v42, %v3527_v43  ;;  %v3534_v48 = vor.u32 %v4193_v45, %v3533_v44  ;;  %v3486_v30 = vor.u32 %v4181_v28, %v3485_v27  ;;  %v3645_v42 = vld [vmem:[#allocation11 + $0x90] sm:$0xf]  ;;  %v4222_v44 = vld [vmem:[#allocation11 + $0x98] sm:$0xf0]  ;;  %v4221_v45 = vld [vmem:[#allocation11 + $0x94] sm:$0xf] }
 0x24c   : > { %v4229_v27 = vld [vmem:[#allocation13 + $0x10] sm:$0xff] }
 0x24d   : > { %1590 = vmatpush.bf16.msrb.mxu2 %v3542_v38  ;;  %v3665_v38 = vld [vmem:[#allocation11 + $0xb0] sm:$0xf] }
 0x24e   : > { %v3597_v28 = vld [vmem:[#allocation11 + $0x30] sm:$0xf] }
 0x251   : > { %v4512_v49 = vpop.eup %4511  ;;  %1591 = vmatpush.bf16.msrb.mxu2 %v3530_v47  ;;  %v3646_v47 = vor.u32 %v4222_v44, %v3645_v42  ;;  %v3593_v44 = vld [vmem:[#allocation11 + $0x20] sm:$0xf] }
 0x252   : > { %v1280_v50 = vsel %vm1215_vm1, %v4512_v49, 0.0 }
 0x253   : > { %1281 = vadd.xlane.f32.xlu1 %v1280_v50  ;;  %v4189_v50 = vld [vmem:[#allocation10 + $0x50] sm:$0xf0] }
 0x29e   : > { %v1230_v51 = vpop.xlane.xlu2 %1229 }
 0x29f   : > { %4513 = vrcp.f32 %v1230_v51  ;;  %v4188_v51 = vld [vmem:[#allocation10 + $0x4c] sm:$0xf] }
 0x2a5   : > { %v4514_v53 = vpop.eup %4513 }
 0x2a6   : > { %v1233_v52 = vpop.xlane.xlu2 %1232  ;;  %v1236_v55 = vmul.f32 %v4514_v53, %v4506_v36  ;;  %v4196_v36 = vld [vmem:[#allocation10 + $0x88] sm:$0xf0]  ;;  %v3521_v53 = vld [vmem:[#allocation10 + $0x50] sm:$0xf] }
 0x2a7   : > { %4515 = vrcp.f32 %v1233_v52  ;;  %v3515_v52 = vld [vmem:[#allocation10 + $0x54] sm:$0xf0] }
 0x2ad   : > { %v4516_v54 = vpop.eup %4515 }
 0x2ae   : > { %v1237_v56 = vmul.f32 %v4516_v54, %v4508_v39  ;;  %v3546_v39 = vor.u32 %v4196_v36, %v3545_v35  ;;  %v4190_v54 = vld [vmem:[#allocation10 + $0x58] sm:$0xf0]  ;;  %v3658_v35 = vor.u32 %v4225_v34, %v3657_v32  ;;  %v4224_v36 = vld [vmem:[#allocation11 + $0xac] sm:$0xf]  ;;  %v3599_v32 = vld [vmem:[#allocation11 + $0x3c] sm:$0xf0] }
 0x2af   : > { %v3605_v34 = vld [vmem:[#allocation11 + $0x38] sm:$0xf] }
 0x2b0   : > { %v1238_v57 = vpack.c.bf16 %v1237_v56, %v1236_v55  ;;  %1604 = vmatpush.bf16.msrb.mxu3 %v3546_v39  ;;  %v3518_v56 = vor.u32 %v4188_v51, %v3515_v52  ;;  %v3662_v39 = vor.u32 %v4224_v36, %v3659_v37  ;;  %1807 = vmatpush.bf16.msrb.mxu0 %v3658_v35  ;;  %v4211_v35 = vld [vmem:[#allocation11 + $0x40] sm:$0xf0] }
 0x2b1   : > { %v3606_v37 = vor.u32 %v4211_v35, %v3605_v34 }
 0x2b2   : > { %3442 = vmatmul.msk.bf16.vlgmr.msra.gmra.mxu3 %vm1215_vm1, %v1238_v57  ;;  %v3522_v57 = vor.u32 %v4190_v54, %v3521_v53  ;;  %1592 = vmatpush.bf16.msrb.mxu2 %v3518_v56  ;;  %v4498_v53 = vld [vmem:[%s5455_s4] ss:$0 sm:$0xff] }
 0x2b4   : > { %1605 = vmatpush.bf16.msrb.mxu3 %v3534_v48  ;;  %1808 = vmatpush.bf16.msrb.mxu0 %v3646_v47 }
 0x2b6   : > { %1593 = vmatpush.bf16.msrb.mxu2 %v3506_v8  ;;  %v3622_v8 = vor.u32 %v4216_v6, %v3621_v5  ;;  %v3821_v6 = vld [vmem:[#allocation14 + $0xf0] sm:$0xf] }
 0x2b8   : > { %1606 = vmatpush.bf16.msrb.mxu3 %v3522_v57 }
 0x2ba   : > { %1594 = vmatpush.bf16.msrb.mxu2 %v3494_v19  ;;  %v4212_v19 = vld [vmem:[#allocation11 + $0x4c] sm:$0xf] }
 0x2bb   : > { %v3614_v24 = vor.u32 %v4212_v19, %v3611_v22  ;;  %v4262_v22 = vld [vmem:[#allocation14 + $0xd4] sm:$0xf0] }
 0x2bc   : > { %1607 = vmatpush.bf16.msrb.mxu3 %v3510_v9  ;;  %v3623_v9 = vld [vmem:[#allocation11 + $0x6c] sm:$0xf0] }
 0x2bd   : > { %v3626_v13 = vor.u32 %v4215_v7, %v3623_v9  ;;  %v4268_v7 = vld [vmem:[#allocation14 + $0x104] sm:$0xf0] }
 0x2be   : > { %v1279_v58 = vpop.xlane.xlu0 %1278  ;;  %1595 = vmatpush.bf16.msrb.mxu2 %v3482_v29  ;;  %v4210_v29 = vld [vmem:[#allocation11 + $0x38] sm:$0xf0] }
 0x2bf   : > { %4517 = vrcp.f32 %v1279_v58 }
 0x2c0   : > { %1608 = vmatpush.bf16.msrb.mxu3 %v3498_v21  ;;  %v3610_v21 = vor.u32 %v4213_v18, %v3609_v17  ;;  %v3822_v17 = vor.u32 %v4268_v7, %v3821_v6  ;;  %v3829_v7 = vld [vmem:[#allocation14 + $0xf8] sm:$0xf] }
 0x2c4   : > { %1609 = vmatpush.bf16.msrb.mxu3 %v3486_v30  ;;  %v4209_v30 = vld [vmem:[#allocation11 + $0x34] sm:$0xf] }
 0x2c5   : > { %v4518_v60 = vpop.eup %4517  ;;  %v3602_v36 = vor.u32 %v4209_v30, %v3599_v32  ;;  %v4499_v32 = vld [vmem:[%s5508_s23] ss:$0 sm:$0xff] }
 0x2c6   : > { %v1282_v59 = vpop.xlane.xlu1 %1281  ;;  %v1285_v62 = vmul.f32 %v4518_v60, %v4510_v46  ;;  %v3526_v46 = vor.u32 %v4192_v41, %v3525_v40  ;;  %v4226_v40 = vld [vmem:[#allocation11 + $0xb8] sm:$0xf0]  ;;  %v4233_v41 = vld [vmem:[#allocation13 + $0x30] sm:$0xff] }
 0x2c7   : > { %4519 = vrcp.f32 %v1282_v59  ;;  %v3666_v43 = vor.u32 %v4226_v40, %v3665_v38  ;;  %v4228_v38 = vld [vmem:[#allocation13 + $0x8] sm:$0xff]  ;;  %v4207_v40 = vld [vmem:[#allocation11 + $0x20] sm:$0xf0] }
 0x2c8   : > { %1577 = vmatpush.bf16.msra.mxu1 %v3526_v46  ;;  %1941 = vmatpush.bf16.msra.mxu3 %v4234_v31  ;;  %v3647_v46 = vld [vmem:[#allocation11 + $0x9c] sm:$0xf0]  ;;  %v3598_v31 = vor.u32 %v4210_v29, %v3597_v28 }
 0x2c9   : > { %v3650_v48 = vor.u32 %v4221_v45, %v3647_v46  ;;  %v4208_v46 = vld [vmem:[#allocation11 + $0x28] sm:$0xf0] }
 0x2ca   : > { %v3594_v47 = vor.u32 %v4208_v46, %v3593_v44 }
 0x2cc   : > { %1942 = vmatpush.bf16.msra.mxu3 %v4233_v41  ;;  %v4206_v41 = vld [vmem:[#allocation11 + $0x1c] sm:$0xf] }
 0x2cd   : > { %v4520_v61 = vpop.eup %4519 }
 0x2ce   : > { %v1286_v63 = vmul.f32 %v4520_v61, %v4512_v49  ;;  %v3513_v49 = vld [vmem:[#allocation10 + $0x48] sm:$0xf] }
 0x2cf   : > { %v3514_v55 = vor.u32 %v4189_v50, %v3513_v49  ;;  %v3653_v49 = vld [vmem:[#allocation11 + $0x98] sm:$0xf]  ;;  %v4223_v50 = vld [vmem:[#allocation11 + $0xa0] sm:$0xf0] }
 0x2d0   : > { %v1287_v0 = vpack.c.bf16 %v1286_v63, %v1285_v62  ;;  %v3654_v51 = vor.u32 %v4223_v50, %v3653_v49  ;;  %v3573_v49 = vld [vmem:[#allocation11] sm:$0xf]  ;;  %v4204_v50 = vld [vmem:[#allocation11 + $0x8] sm:$0xf0] }
 0x2d1   : > { %1578 = vmatpush.bf16.msra.mxu1 %v3514_v55 }
 0x2d2   : > { %3441 = vmatmul.msk.bf16.vlgmr.msra.gmra.mxu2 %vm1215_vm1, %v1287_v0 }
 0x2d3   : > { %1835 = vmatpush.bf16.msra.mxu2 %v3666_v43  ;;  %v3587_v43 = vld [vmem:[#allocation11 + $0x24] sm:$0xf0] }
 0x2d4   : > { %v3590_v45 = vor.u32 %v4206_v41, %v3587_v43 }
 0x2d5   : > { %1579 = vmatpush.bf16.msra.mxu1 %v3502_v4  ;;  %v4231_v4 = vld [vmem:[#allocation13 + $0x20] sm:$0xff] }
 0x2d7   : > { %1836 = vmatpush.bf16.msra.mxu2 %v3654_v51  ;;  %v4203_v51 = vld [vmem:[#allocation11 + $0x4] sm:$0xf] }
 0x2d9   : > { %1580 = vmatpush.bf16.msra.mxu1 %v3490_v14  ;;  %v3630_v14 = vor.u32 %v4217_v11, %v3629_v10  ;;  %v3877_v10 = vld [vmem:[#allocation14 + $0x158] sm:$0xf]  ;;  %v4281_v11 = vld [vmem:[#allocation14 + $0x16c] sm:$0xf0] }
 0x2dd   : > { %1581 = vmatpush.bf16.msra.mxu1 %v3478_v25  ;;  %v4214_v25 = vld [vmem:[#allocation11 + $0x58] sm:$0xf0] }
 0x2de   : > { %v3618_v26 = vor.u32 %v4214_v25, %v3617_v23  ;;  %v4259_v23 = vld [vmem:[#allocation14 + $0xc4] sm:$0xf] }
 0x2e1   : > { %1821 = vmatpush.bf16.msrb.mxu1 %v3662_v39  ;;  %v3585_v39 = vld [vmem:[#allocation11 + $0x18] sm:$0xf] }
 0x2e2   : > { %v3586_v42 = vor.u32 %v4207_v40, %v3585_v39 }
 0x2e5   : > { %1822 = vmatpush.bf16.msrb.mxu1 %v3650_v48  ;;  %v4227_v48 = vld [vmem:[#allocation13] sm:$0xff] }
 0x335   : > { %v1325_v58 = vpop.f32.mrf.mxu3 }
 0x33d   : > { %v1327_v60 = vpop.f32.mrf.mxu3 }
 0x355   : > { %v1304_v59 = vpop.f32.mrf.mxu2 }
 0x356   : > { %v1326_v62 = vadd.f32 %v1325_v58, %v1304_v59  ;;  %v4232_v58 = vld [vmem:[#allocation13 + $0x28] sm:$0xff]  ;;  %v3633_v59 = vld [vmem:[#allocation11 + $0x78] sm:$0xf] }
 0x357   : > { %1943 = vmatpush.bf16.msra.mxu3 %v4232_v58  ;;  %v3869_v58 = vld [vmem:[#allocation14 + $0x150] sm:$0xf] }
 0x35b   : > { %1944 = vmatpush.bf16.msra.mxu3 %v4231_v4 }
 0x35d   : > { %v1306_v61 = vpop.f32.mrf.mxu2 }
 0x35e   : > { %v1328_v63 = vadd.f32 %v1327_v60, %v1306_v61  ;;  %v4219_v60 = vld [vmem:[#allocation11 + $0x80] sm:$0xf0]  ;;  %v4218_v61 = vld [vmem:[#allocation11 + $0x7c] sm:$0xf] }
 0x35f   : > { %1945 = vmatpush.bf16.msra.mxu3 %v4230_v16  ;;  %v3879_v16 = vld [vmem:[#allocation14 + $0x170] sm:$0xf0] }
 0x360   : > { %v1330_v0 = vpack.c.bf16 %v1328_v63, %v1326_v62  ;;  %v3634_v62 = vor.u32 %v4219_v60, %v3633_v59  ;;  %v3635_v63 = vld [vmem:[#allocation11 + $0x84] sm:$0xf0]  ;;  %v4277_v60 = vld [vmem:[#allocation14 + $0x154] sm:$0xf] }
 0x361   : > { %v3638_v2 = vor.u32 %v4218_v61, %v3635_v63  ;;  %v4280_v59 = vld [vmem:[#allocation14 + $0x164] sm:$0xf0]  ;;  %v3845_v63 = vld [vmem:[#allocation14 + $0x120] sm:$0xf] }
 0x362   : > { %1407 = vmatmul.bf16.vlgmr.msra.gmra.mxu0 %v1330_v0  ;;  %v3641_v0 = vld [vmem:[#allocation11 + $0x80] sm:$0xf]  ;;  %v3870_v61 = vor.u32 %v4280_v59, %v3869_v58  ;;  %v3853_v58 = vld [vmem:[#allocation14 + $0x128] sm:$0xf] }
 0x363   : > { %v3642_v3 = vor.u32 %v4220_v1, %v3641_v0  ;;  %1809 = vmatpush.bf16.msrb.mxu0 %v3634_v62  ;;  %1823 = vmatpush.bf16.msrb.mxu1 %v3638_v2  ;;  %v3871_v62 = vld [vmem:[#allocation14 + $0x168] sm:$0xf0]  ;;  %v4274_v0 = vld [vmem:[#allocation14 + $0x134] sm:$0xf0]  ;;  %v4271_v2 = vld [vmem:[#allocation14 + $0x124] sm:$0xf] }
 0x364   : > { %1946 = vmatpush.bf16.msra.mxu3 %v4229_v27  ;;  %v3874_v1 = vor.u32 %v4277_v60, %v3871_v62  ;;  %v3846_v4 = vor.u32 %v4274_v0, %v3845_v63  ;;  %v4275_v59 = vld [vmem:[#allocation14 + $0x13c] sm:$0xf0]  ;;  %v4272_v62 = vld [vmem:[#allocation14 + $0x12c] sm:$0xf]  ;;  %v3855_v63 = vld [vmem:[#allocation14 + $0x140] sm:$0xf0] }
 0x365   : > { %1837 = vmatpush.bf16.msra.mxu2 %v3642_v3  ;;  %v3847_v3 = vld [vmem:[#allocation14 + $0x138] sm:$0xf0]  ;;  %v3858_v0 = vor.u32 %v4272_v62, %v3855_v63  ;;  %v3735_v62 = vld [vmem:[#allocation14 + $0x50] sm:$0xf0]  ;;  %v3837_v63 = vld [vmem:[#allocation14 + $0x100] sm:$0xf] }
 0x366   : > { %v3850_v5 = vor.u32 %v4271_v2, %v3847_v3  ;;  %v4250_v2 = vld [vmem:[#allocation14 + $0x74] sm:$0xf0]  ;;  %v4247_v3 = vld [vmem:[#allocation14 + $0x64] sm:$0xf] }
 0x367   : > { %1810 = vmatpush.bf16.msrb.mxu0 %v3622_v8  ;;  %1824 = vmatpush.bf16.msrb.mxu1 %v3626_v13  ;;  %v4265_v8 = vld [vmem:[#allocation14 + $0xf4] sm:$0xf]  ;;  %v3878_v13 = vor.u32 %v4281_v11, %v3877_v10 }
 0x368   : > { %1947 = vmatpush.bf16.msra.mxu3 %v4228_v38  ;;  %v3831_v10 = vld [vmem:[#allocation14 + $0x110] sm:$0xf0] }
 0x369   : > { %1838 = vmatpush.bf16.msra.mxu2 %v3630_v14  ;;  %v4278_v14 = vld [vmem:[#allocation14 + $0x15c] sm:$0xf] }
 0x36a   : > { %v3882_v18 = vor.u32 %v4278_v14, %v3879_v16  ;;  %v4244_v14 = vld [vmem:[#allocation14 + $0x44] sm:$0xf0]  ;;  %v4241_v16 = vld [vmem:[#allocation14 + $0x34] sm:$0xf] }
 0x36b   : > { %1811 = vmatpush.bf16.msrb.mxu0 %v3610_v21  ;;  %1825 = vmatpush.bf16.msrb.mxu1 %v3614_v24  ;;  %v3797_v21 = vld [vmem:[#allocation14 + $0xc0] sm:$0xf]  ;;  %v3799_v24 = vld [vmem:[#allocation14 + $0xd8] sm:$0xf0] }
 0x36c   : > { %1948 = vmatpush.bf16.msra.mxu3 %v4227_v48  ;;  %v3802_v28 = vor.u32 %v4259_v23, %v3799_v24  ;;  %v4260_v24 = vld [vmem:[#allocation14 + $0xcc] sm:$0xf] }
 0x36d   : > { %1839 = vmatpush.bf16.msra.mxu2 %v3618_v26  ;;  %v3798_v26 = vor.u32 %v4262_v22, %v3797_v21  ;;  %v4263_v21 = vld [vmem:[#allocation14 + $0xdc] sm:$0xf0] }
 0x36f   : > { %1812 = vmatpush.bf16.msrb.mxu0 %v3598_v31  ;;  %1826 = vmatpush.bf16.msrb.mxu1 %v3602_v36 }
 0x371   : > { %1840 = vmatpush.bf16.msra.mxu2 %v3606_v37 }
 0x373   : > { %1813 = vmatpush.bf16.msrb.mxu0 %v3586_v42  ;;  %1827 = vmatpush.bf16.msrb.mxu1 %v3590_v45 }
 0x375   : > { %1841 = vmatpush.bf16.msra.mxu2 %v3594_v47 }
 0x3df   : > { %v1408_v52 = vpop.f32.mrf.mxu0 }
 0x3e0   : > { %v1409_v55 = vadd.f32 %v4498_v53, %v1408_v52  ;;  %v3574_v52 = vor.u32 %v4204_v50, %v3573_v49 }
 0x3e2   : > { %1814 = vmatpush.bf16.msrb.mxu0 %v3574_v52 }
 0x3e6   : > { %2262 = vmatpush.bf16.msra.mxu0 %v3870_v61  ;;  %v3854_v61 = vor.u32 %v4275_v59, %v3853_v58  ;;  %v3733_v58 = vld [vmem:[#allocation14 + $0x38] sm:$0xf]  ;;  %v4245_v59 = vld [vmem:[#allocation14 + $0x4c] sm:$0xf0] }
 0x3e7   : > { %v1410_v54 = vpop.f32.mrf.mxu0 }
 0x3e8   : > { %v1411_v56 = vadd.f32 %v4498_v53, %v1410_v54  ;;  %v3575_v53 = vld [vmem:[#allocation11 + $0xc] sm:$0xf0]  ;;  %v3581_v54 = vld [vmem:[#allocation11 + $0x8] sm:$0xf] }
 0x3ea   : > { %v1413_v57 = vpack.c.bf16 %v1411_v56, %v1409_v55  ;;  %v4205_v55 = vld [vmem:[#allocation11 + $0x10] sm:$0xf0]  ;;  %v3578_v56 = vor.u32 %v4203_v51, %v3575_v53  ;;  %2263 = vmatpush.bf16.msra.mxu0 %v3846_v4  ;;  %v3773_v53 = vld [vmem:[#allocation14 + $0x90] sm:$0xf] }
 0x3ec   : > { %1582 = vmatmul.bf16.vlgmr.msra.gmra.mxu1 %v1413_v57  ;;  %1596 = vmatmul.bf16.vlgmr.msrb.gmra.mxu2 %v1413_v57 }
 0x3ed   : > { %1610 = vmatmul.bf16.vlgmr.msrb.gmra.mxu3 %v1413_v57  ;;  %v3582_v57 = vor.u32 %v4205_v55, %v3581_v54  ;;  %1828 = vmatpush.bf16.msrb.mxu1 %v3578_v56  ;;  %v4256_v54 = vld [vmem:[#allocation14 + $0xa4] sm:$0xf0]  ;;  %v4253_v55 = vld [vmem:[#allocation14 + $0x94] sm:$0xf] }
 0x3ee   : > { %2304 = vmatpush.bf16.msrb.mxu3 %v3882_v18  ;;  %2264 = vmatpush.bf16.msra.mxu0 %v3822_v17  ;;  %v3774_v56 = vor.u32 %v4256_v54, %v3773_v53  ;;  %v3727_v18 = vld [vmem:[#allocation14 + $0x48] sm:$0xf0] }
 0x3ef   : > { %1842 = vmatpush.bf16.msra.mxu2 %v3582_v57  ;;  %v3775_v57 = vld [vmem:[#allocation14 + $0xa8] sm:$0xf0]  ;;  %v3730_v22 = vor.u32 %v4241_v16, %v3727_v18  ;;  %v4261_v16 = vld [vmem:[#allocation14 + $0xd4] sm:$0xf] }
 0x3f0   : > { %v3778_v60 = vor.u32 %v4253_v55, %v3775_v57  ;;  %v4273_v55 = vld [vmem:[#allocation14 + $0x134] sm:$0xf] }
 0x3f1   : > { %2276 = vmatpush.bf16.msra.mxu1 %v3874_v1  ;;  %v3749_v1 = vld [vmem:[#allocation14 + $0x60] sm:$0xf] }
 0x3f2   : > { %2265 = vmatpush.bf16.msra.mxu0 %v3798_v26  ;;  %v3750_v4 = vor.u32 %v4250_v2, %v3749_v1  ;;  %2305 = vmatpush.bf16.msrb.mxu3 %v3858_v0  ;;  %v4270_v0 = vld [vmem:[#allocation14 + $0x114] sm:$0xf0] }
 0x3f3   : > { %2290 = vmatpush.bf16.msrb.mxu2 %v3878_v13  ;;  %v3725_v13 = vld [vmem:[#allocation14 + $0x30] sm:$0xf]  ;;  %v3838_v2 = vor.u32 %v4270_v0, %v3837_v63  ;;  %v4500_v0 = vld [vmem:[%s5510_s26] ss:$0 sm:$0xff] }
 0x3f4   : > { %v3726_v17 = vor.u32 %v4244_v14, %v3725_v13 }
 0x3f5   : > { %2277 = vmatpush.bf16.msra.mxu1 %v3850_v5  ;;  %v3751_v5 = vld [vmem:[#allocation14 + $0x78] sm:$0xf0] }
 0x3f6   : > { %2266 = vmatpush.bf16.msra.mxu0 %v3774_v56  ;;  %v3754_v6 = vor.u32 %v4247_v3, %v3751_v5  ;;  %v3863_v56 = vld [vmem:[#allocation14 + $0x148] sm:$0xf0]  ;;  %v4267_v3 = vld [vmem:[#allocation14 + $0x104] sm:$0xf] }
 0x3f7   : > { %2291 = vmatpush.bf16.msrb.mxu2 %v3854_v61  ;;  %v3866_v57 = vor.u32 %v4273_v55, %v3863_v56  ;;  %v3734_v61 = vor.u32 %v4245_v59, %v3733_v58 }
 0x3fa   : > { %2267 = vmatpush.bf16.msra.mxu0 %v3750_v4  ;;  %v3839_v4 = vld [vmem:[#allocation14 + $0x118] sm:$0xf0] }
 0x3fb   : > { %v3842_v5 = vor.u32 %v4267_v3, %v3839_v4 }
 0x3fd   : > { %1949 = vmatmul.bf16.vlgmr.msra.gmra.mxu3 %v5279_v33  ;;  %v3823_v33 = vld [vmem:[#allocation14 + $0x108] sm:$0xf0] }
 0x3fe   : > { %v3826_v19 = vor.u32 %v4265_v8, %v3823_v33  ;;  %v4269_v8 = vld [vmem:[#allocation14 + $0x10c] sm:$0xf0]  ;;  %2268 = vmatpush.bf16.msra.mxu0 %v3726_v17  ;;  %v3815_v17 = vld [vmem:[#allocation14 + $0xe8] sm:$0xf0] }
 0x3ff   : > { %v3830_v33 = vor.u32 %v4269_v8, %v3829_v7  ;;  %v4239_v7 = vld [vmem:[#allocation14 + $0x1c] sm:$0xf0]  ;;  %v4236_v8 = vld [vmem:[#allocation14 + $0xc] sm:$0xf]  ;;  %v3818_v18 = vor.u32 %v4261_v16, %v3815_v17  ;;  %v2008_v17 = vld [vmem:[%s5511_s10] sm:$0x3f]  ;;  %s3048_s10 = scalar_lea.hbm %s5515_s5, %s4339_s22 }
 0x400   : > { %2278 = vmatpush.bf16.msra.mxu1 %v3826_v19  ;;  %v3805_v19 = vld [vmem:[#allocation14 + $0xc8] sm:$0xf]  ;;  %s3051_s6 = sshll.u32 %s3048_s10, 4  ;;  %s3052_s6 = int_to_ptr.hbm [resolvable:$true] %s3051_s6 }
 0x401   : > { %2292 = vmatpush.bf16.msrb.mxu2 %v3830_v33  ;;  %v3806_v23 = vor.u32 %v4263_v21, %v3805_v19  ;;  %v3711_v33 = vld [vmem:[#allocation14 + $0x20] sm:$0xf0]  ;;  %v3789_v19 = vld [vmem:[#allocation14 + $0xa0] sm:$0xf]  ;;  %v4258_v21 = vld [vmem:[#allocation14 + $0xb4] sm:$0xf0] }
 0x402   : > { %v3714_v13 = vor.u32 %v4236_v8, %v3711_v33  ;;  %s4881_s3 = sshra.s32 %s3052_s6, 4  ;;  %s4882_s3 = int_to_ptr.hbm [resolvable:$true] %s4881_s3 }
 0x403   : > { %s4883_s23 = scalar_lea.hbm %s4882_s3, 16  ;;  %p4888_p12 = scmp.lt.s32.totalorder %s4882_s3, %s5515_s5 }
 0x404   : > { %2279 = vmatpush.bf16.msra.mxu1 %v3802_v28  ;;  %v4238_v28 = vld [vmem:[#allocation14 + $0x14] sm:$0xf0]  ;;  %p4884_p1 = scmp.ne.s32.totalorder %s4882_s3, %s4883_s23  ;;  %p4889_p7 = scmp.lt.s32.totalorder %s4887_s12, %s4883_s23 }
 0x405   : > { %2293 = vmatpush.bf16.msrb.mxu2 %v3806_v23  ;;  %v3790_v23 = vor.u32 %v4258_v21, %v3789_v19  ;;  %v2010_v21 = vperm.slane %v2008_v17, 0 }
 0x406   : > { %p4885_p3 = pnand %p4884_p1, %p5214_p4  ;;  %p4890_p8 = por %p4889_p7, %p4888_p12 }
 0x408   : > { %2280 = vmatpush.bf16.msra.mxu1 %v3778_v60  ;;  %v4242_v60 = vld [vmem:[#allocation14 + $0x3c] sm:$0xf]  ;;  %p4886_p5 = pneg %p4885_p3 }
 0x409   : > { %v3738_v1 = vor.u32 %v4242_v60, %v3735_v62 }
 0x40a   : > { %p4891_p9 = pnand %p4890_p8, %p4886_p5 }
 0x40c   : > { %2281 = vmatpush.bf16.msra.mxu1 %v3754_v6  ;;  %v3709_v6 = vld [vmem:[#allocation14 + $0x8] sm:$0xf] }
 0x410   : > { %2282 = vmatpush.bf16.msra.mxu1 %v3730_v22  ;;  %v4255_v22 = vld [vmem:[#allocation14 + $0xa4] sm:$0xf] }
 0x469   : > { %v1583_v9 = vpop.f32.mrf.mxu1 }
 0x46a   : > { %v1622_v30 = vrot.slane %v1583_v9, 6  ;;  %v4266_v9 = vld [vmem:[#allocation14 + $0xfc] sm:$0xf] }
 0x46b   : > { %v3834_v11 = vor.u32 %v4266_v9, %v3831_v10  ;;  %v3710_v9 = vor.u32 %v4239_v7, %v3709_v6  ;;  %v3813_v10 = vld [vmem:[#allocation14 + $0xd0] sm:$0xf] }
 0x46d   : > { %2306 = vmatpush.bf16.msrb.mxu3 %v3834_v11  ;;  %v4264_v11 = vld [vmem:[#allocation14 + $0xe4] sm:$0xf0] }
 0x46e   : > { %v3814_v14 = vor.u32 %v4264_v11, %v3813_v10 }
 0x46f   : > { %v1597_v25 = vpop.f32.mrf.mxu2 }
 0x470   : > { %v1611_v27 = vpop.f32.mrf.mxu3  ;;  %v1633_v37 = vrot.slane %v1597_v25, 7  ;;  %v3807_v25 = vld [vmem:[#allocation14 + $0xe0] sm:$0xf0] }
 0x471   : > { %v1585_v29 = vpop.f32.mrf.mxu1  ;;  %v1620_v38 = vadd.f32 %v4499_v32, %v1611_v27  ;;  %v3810_v26 = vor.u32 %v4260_v24, %v3807_v25  ;;  %v3701_v27 = vld [vmem:[#allocation14] sm:$0xf]  ;;  %v3791_v24 = vld [vmem:[#allocation14 + $0xb8] sm:$0xf0] }
 0x472   : > { %v1623_v31 = vrot.slane %v1585_v29, 6  ;;  %v4235_v29 = vld [vmem:[#allocation14 + $0x4] sm:$0xf]  ;;  %v3794_v25 = vor.u32 %v4255_v22, %v3791_v24  ;;  %v2011_v22 = vperm.slane %v2008_v17, 1 }
 0x473   : > { %2307 = vmatpush.bf16.msrb.mxu3 %v3810_v26  ;;  %v3765_v26 = vld [vmem:[#allocation14 + $0x70] sm:$0xf] }
 0x474   : > { %v1626_v34 = vsel %vm1624_vm3, %v1623_v31, %v1622_v30  ;;  %v1625_v45 = vsel %vm1624_vm3, %v1622_v30, %v1623_v31  ;;  %v3702_v30 = vor.u32 %v4238_v28, %v3701_v27  ;;  %v3703_v31 = vld [vmem:[#allocation14 + $0x18] sm:$0xf0]  ;;  %v4252_v27 = vld [vmem:[#allocation14 + $0x84] sm:$0xf0]  ;;  %v4249_v28 = vld [vmem:[#allocation14 + $0x74] sm:$0xf] }
 0x475   : > { %v1629_v35 = vsel %vm1627_vm4, %v1626_v34, 0.0  ;;  %v4257_v34 = vld [vmem:[#allocation14 + $0xac] sm:$0xf0] }
 0x476   : > { %v1631_v42 = vadd.f32 %v1629_v35, %v1620_v38  ;;  %v3706_v35 = vor.u32 %v4235_v29, %v3703_v31  ;;  %v3783_v38 = vld [vmem:[#allocation14 + $0xb0] sm:$0xf0]  ;;  %2269 = vmatpush.bf16.msra.mxu0 %v3702_v30  ;;  %v3767_v31 = vld [vmem:[#allocation14 + $0x88] sm:$0xf0] }
 0x477   : > { %v1599_v36 = vpop.f32.mrf.mxu2 }
 0x478   : > { %v1634_v39 = vrot.slane %v1599_v36, 7  ;;  %v1613_v40 = vpop.f32.mrf.mxu3  ;;  %2283 = vmatpush.bf16.msra.mxu1 %v3706_v35  ;;  %v3741_v35 = vld [vmem:[#allocation14 + $0x40] sm:$0xf] }
 0x479   : > { %v1621_v41 = vadd.f32 %v4499_v32, %v1613_v40  ;;  %v3781_v32 = vld [vmem:[#allocation14 + $0x98] sm:$0xf] }
 0x47a   : > { %v1636_v43 = vsel %vm1635_vm5, %v1633_v37, %v1634_v39  ;;  %v1637_v44 = vsel %vm1635_vm5, %v1634_v39, %v1633_v37  ;;  %v3782_v36 = vor.u32 %v4257_v34, %v3781_v32  ;;  %v4254_v37 = vld [vmem:[#allocation14 + $0x9c] sm:$0xf]  ;;  %v3885_v39 = vld [vmem:[#allocation14 + $0x160] sm:$0xf]  ;;  %v3766_v32 = vor.u32 %v4252_v27, %v3765_v26 }
 0x47b   : > { %v1640_v46 = vsel %vm1638_vm6, %v1637_v44, 0.0  ;;  %v1632_v47 = vadd.f32 %v1625_v45, %v1621_v41  ;;  %v3786_v40 = vor.u32 %v4254_v37, %v3783_v38  ;;  %v4282_v41 = vld [vmem:[#allocation14 + $0x174] sm:$0xf0]  ;;  %v3770_v34 = vor.u32 %v4249_v28, %v3767_v31  ;;  %v4243_v37 = vld [vmem:[#allocation14 + $0x44] sm:$0xf] }
 0x47c   : > { %v1642_v48 = vadd.f32 %v1640_v46, %v1631_v42  ;;  %v4279_v42 = vld [vmem:[#allocation14 + $0x164] sm:$0xf]  ;;  %2294 = vmatpush.bf16.msrb.mxu2 %v3782_v36  ;;  %v3886_v44 = vor.u32 %v4282_v41, %v3885_v39  ;;  %v3757_v46 = vld [vmem:[#allocation14 + $0x68] sm:$0xf]  ;;  %v4246_v36 = vld [vmem:[#allocation14 + $0x54] sm:$0xf0] }
 0x47d   : > { %v1643_v49 = vadd.f32 %v1636_v43, %v1632_v47  ;;  %v3887_v43 = vld [vmem:[#allocation14 + $0x178] sm:$0xf0]  ;;  %2308 = vmatpush.bf16.msrb.mxu3 %v3786_v40  ;;  %v4251_v47 = vld [vmem:[#allocation14 + $0x7c] sm:$0xf0]  ;;  %v3742_v39 = vor.u32 %v4246_v36, %v3741_v35  ;;  %v3717_v41 = vld [vmem:[#allocation14 + $0x10] sm:$0xf] }
 0x47e   : > { %v1644_v50 = vmax.f32 %v1642_v48, 0.0  ;;  %v3890_v45 = vor.u32 %v4279_v42, %v3887_v43  ;;  %v4248_v48 = vld [vmem:[#allocation14 + $0x6c] sm:$0xf]  ;;  %v3743_v38 = vld [vmem:[#allocation14 + $0x58] sm:$0xf0] }
 0x47f   : > { %v1645_v51 = vmax.f32 %v1643_v49, 0.0  ;;  %v3758_v49 = vor.u32 %v4251_v47, %v3757_v46  ;;  %v3746_v40 = vor.u32 %v4243_v37, %v3743_v38  ;;  %v4240_v42 = vld [vmem:[#allocation14 + $0x24] sm:$0xf0]  ;;  %v4237_v43 = vld [vmem:[#allocation14 + $0x14] sm:$0xf] }
 0x480   : > { %v4501_v46 = vld [vmem:[%s5509_s29] ss:$0 sm:$0xff] }
 0x481   : > { %v1646_v52 = vpack.c.bf16 %v1645_v51, %v1644_v50  ;;  %v3759_v50 = vld [vmem:[#allocation14 + $0x80] sm:$0xf0]  ;;  %v3861_v51 = vld [vmem:[#allocation14 + $0x130] sm:$0xf]  ;;  %2295 = vmatpush.bf16.msrb.mxu2 %v3758_v49 }
 0x482   : > { %v3762_v53 = vor.u32 %v4248_v48, %v3759_v50 }
 0x483   : > { %1815 = vmatmul.bf16.vlgmr.msrb.gmra.mxu0 %v1646_v52  ;;  %1829 = vmatmul.bf16.vlgmr.msrb.gmra.mxu1 %v1646_v52 }
 0x484   : > { %1843 = vmatmul.bf16.vlgmr.msra.gmra.mxu2 %v1646_v52  ;;  %2318 = vmatpush.bf16.msrb.mxu0 %v3886_v44  ;;  %v4276_v52 = vld [vmem:[#allocation14 + $0x144] sm:$0xf0]  ;;  %v3719_v44 = vld [vmem:[#allocation14 + $0x28] sm:$0xf0] }
 0x485   : > { %2332 = vmatpush.bf16.msrb.mxu1 %v3890_v45  ;;  %v3862_v54 = vor.u32 %v4276_v52, %v3861_v51  ;;  %2309 = vmatpush.bf16.msrb.mxu3 %v3762_v53  ;;  %v1950_v51 = vpop.f32.mrf.mxu3  ;;  %v3722_v55 = vor.u32 %v4237_v43, %v3719_v44  ;;  %v2012_v43 = vperm.slane %v2008_v17, 2  ;;  %v2013_v44 = vperm.slane %v2008_v17, 3 }
 0x486   : > { %2296 = vmatpush.bf16.msrb.mxu2 %v3734_v61  ;;  %v1951_v7 = vadd.f32 %v4500_v0, %v1950_v51 }
 0x488   : > { %2319 = vmatpush.bf16.msrb.mxu0 %v3862_v54  ;;  %v3718_v54 = vor.u32 %v4240_v42, %v3717_v41  ;;  %v2014_v41 = vperm.slane %v2008_v17, 4  ;;  %v2015_v42 = vperm.slane %v2008_v17, 5 }
 0x489   : > { %2333 = vmatpush.bf16.msrb.mxu1 %v3866_v57  ;;  %2310 = vmatpush.bf16.msrb.mxu3 %v3738_v1 }
 0x48a   : > { %2297 = vmatpush.bf16.msrb.mxu2 %v3710_v9 }
 0x48c   : > { %2320 = vmatpush.bf16.msrb.mxu0 %v3838_v2 }
 0x48d   : > { %2334 = vmatpush.bf16.msrb.mxu1 %v3842_v5  ;;  %2311 = vmatpush.bf16.msrb.mxu3 %v3714_v13  ;;  %v1952_v6 = vpop.f32.mrf.mxu3 }
 0x48e   : > { %v1953_v33 = vadd.f32 %v4500_v0, %v1952_v6 }
 0x490   : > { %2321 = vmatpush.bf16.msrb.mxu0 %v3814_v14 }
 0x491   : > { %2335 = vmatpush.bf16.msrb.mxu1 %v3818_v18 }
 0x494   : > { %2322 = vmatpush.bf16.msrb.mxu0 %v3790_v23 }
 0x495   : > { %2336 = vmatpush.bf16.msrb.mxu1 %v3794_v25 }
 0x498   : > { %2323 = vmatpush.bf16.msrb.mxu0 %v3766_v32 }
 0x499   : > { %2337 = vmatpush.bf16.msrb.mxu1 %v3770_v34 }
 0x49c   : > { %2324 = vmatpush.bf16.msrb.mxu0 %v3742_v39 }
 0x49d   : > { %2338 = vmatpush.bf16.msrb.mxu1 %v3746_v40 }
 0x4a0   : > { %2325 = vmatpush.bf16.msrb.mxu0 %v3718_v54 }
 0x4a1   : > { %2339 = vmatpush.bf16.msrb.mxu1 %v3722_v55 }
 0x500   : > { %v1816_v29 = vpop.f32.mrf.mxu0  ;;  %v1830_v30 = vpop.f32.mrf.mxu1 }
 0x501   : > { %v1855_v47 = vrot.slane %v1816_v29, 6  ;;  %v1863_v48 = vrot.slane %v1830_v30, 7 }
 0x507   : > { %v1844_v45 = vpop.f32.mrf.mxu2 }
 0x508   : > { %v1818_v49 = vpop.f32.mrf.mxu0  ;;  %v1832_v50 = vpop.f32.mrf.mxu1  ;;  %v1853_v56 = vadd.f32 %v4501_v46, %v1844_v45 }
 0x509   : > { %v1856_v52 = vrot.slane %v1818_v49, 6  ;;  %v1864_v53 = vrot.slane %v1832_v50, 7 }
 0x50b   : > { %v1858_v57 = vsel %vm1624_vm3, %v1856_v52, %v1855_v47  ;;  %v1866_v58 = vsel %vm1635_vm5, %v1864_v53, %v1863_v48  ;;  %v1857_v2 = vsel %vm1624_vm3, %v1855_v47, %v1856_v52  ;;  %v1865_v5 = vsel %vm1635_vm5, %v1863_v48, %v1864_v53 }
 0x50c   : > { %v1859_v59 = vsel %vm1627_vm4, %v1858_v57, 0.0  ;;  %v1867_v61 = vsel %vm1638_vm6, %v1866_v58, 0.0 }
 0x50d   : > { %v1861_v60 = vadd.f32 %v1859_v59, %v1853_v56 }
 0x50f   : > { %v1869_v62 = vadd.f32 %v1867_v61, %v1861_v60  ;;  %v1846_v63 = vpop.f32.mrf.mxu2 }
 0x510   : > { %v1854_v1 = vadd.f32 %v4501_v46, %v1846_v63 }
 0x511   : > { %v1871_v3 = vmax.f32 %v1869_v62, 0.0 }
 0x512   : > { %v1862_v4 = vadd.f32 %v1857_v2, %v1854_v1 }
 0x513   : > { %v5350_v9 = vadd.f32 %v1951_v7, %v1871_v3 }
 0x514   : > { %v1870_v8 = vadd.f32 %v1865_v5, %v1862_v4 }
 0x515   : > { %v1957_v13 = vmax.f32 %v5350_v9, 0.0 }
 0x516   : > { %v1872_v10 = vmax.f32 %v1870_v8, 0.0 }
 0x518   : > { %v5352_v11 = vadd.f32 %v1953_v33, %v1872_v10 }
 0x51a   : > { %v1958_v14 = vmax.f32 %v5352_v11, 0.0 }
 0x51c   : > { %v1959_v16 = vpack.c.bf16 %v1958_v14, %v1957_v13 }
 0x51e   : > { %2270 = vmatmul.bf16.vlgmr.msra.gmra.mxu0 %v1959_v16  ;;  %2284 = vmatmul.bf16.vlgmr.msra.gmra.mxu1 %v1959_v16 }
 0x51f   : > { %2298 = vmatmul.bf16.vlgmr.msrb.gmra.mxu2 %v1959_v16  ;;  %2312 = vmatmul.bf16.vlgmr.msrb.gmra.mxu3 %v1959_v16 }
 0x52e   : > { %2326 = vmatmul.bf16.vlgmr.msrb.gmra.mxu0 %v1959_v16  ;;  %2340 = vmatmul.bf16.vlgmr.msrb.gmra.mxu1 %v1959_v16 }
 0x59b   : > { %v2271_v18 = vpop.f32.mrf.mxu0  ;;  %v2285_v19 = vpop.f32.mrf.mxu1 }
 0x59c   : > { %v2272_v23 = vadd.f32 %v2271_v18, %v2010_v21  ;;  %v2286_v24 = vadd.f32 %v2285_v19, %v2011_v22 }
 0x59e   : > { %v2346_v29 = vpack.c.bf16 %v2286_v24, %v2272_v23 }
 0x5a0   : > { %v2358_v34 = vunpack.c.h.b16 %v2346_v29  ;;  %v2354_v46 = vunpack.c.l.b16 %v2346_v29 }
 0x5a2   : > { %v2299_v25 = vpop.f32.mrf.mxu2  ;;  %v2313_v26 = vpop.f32.mrf.mxu3 }
 0x5a3   : > { %v2273_v27 = vpop.f32.mrf.mxu0  ;;  %v2287_v28 = vpop.f32.mrf.mxu1  ;;  %v2300_v51 = vadd.f32 %v2299_v25, %v2012_v43  ;;  %v2314_v52 = vadd.f32 %v2313_v26, %v2013_v44 }
 0x5a4   : > { %v2274_v30 = vadd.f32 %v2273_v27, %v2010_v21  ;;  %v2288_v31 = vadd.f32 %v2287_v28, %v2011_v22 }
 0x5a5   : > { %v2347_v60 = vpack.c.bf16 %v2314_v52, %v2300_v51 }
 0x5a6   : > { %v2349_v32 = vpack.c.bf16 %v2288_v31, %v2274_v30 }
 0x5a7   : > { %v2469_v3 = vunpack.c.l.b16 %v2347_v60  ;;  %v2401_v8 = vunpack.c.h.b16 %v2347_v60 }
 0x5a8   : > { %v2359_v35 = vunpack.c.h.b16 %v2349_v32  ;;  %v2355_v45 = vunpack.c.l.b16 %v2349_v32 }
 0x5aa   : > { %v2360_v36 = vpack.c.b16 %v2359_v35, %v2358_v34  ;;  %v2301_v39 = vpop.f32.mrf.mxu2  ;;  %v2315_v40 = vpop.f32.mrf.mxu3  ;;  %v2356_v53 = vpack.c.b16 %v2355_v45, %v2354_v46 }
 0x5ab   : > { %v2327_v37 = vpop.f32.mrf.mxu0  ;;  %v2341_v38 = vpop.f32.mrf.mxu1  ;;  %v2302_v47 = vadd.f32 %v2301_v39, %v2012_v43  ;;  %v2316_v48 = vadd.f32 %v2315_v40, %v2013_v44 }
 0x5ac   : > { %2369 = vmatpush.bf16.xpose.msra.mxu2 %v2360_v36  ;;  %v2328_v49 = vadd.f32 %v2327_v37, %v2014_v41  ;;  %v2342_v50 = vadd.f32 %v2341_v38, %v2015_v42 }
 0x5ad   : > { %v2350_v54 = vpack.c.bf16 %v2316_v48, %v2302_v47  ;;  %v4290_v48 = vld [vmem:[#allocation16 + $0x38] sm:$0xff] }
 0x5ae   : > { %v2348_v57 = vpack.c.bf16 %v2342_v50, %v2328_v49  ;;  %2559 = vmatpush.bf16.msra.mxu0 %v4290_v48  ;;  %v4300_v48 = vld [vmem:[#allocation17 + $0x4c] sm:$0xf] }
 0x5af   : > { %v2470_v62 = vunpack.c.l.b16 %v2350_v54  ;;  %v2402_v7 = vunpack.c.h.b16 %v2350_v54 }
 0x5b0   : > { %v2407_v63 = vunpack.c.l.b16 %v2348_v57  ;;  %v2448_v0 = vunpack.c.h.b16 %v2348_v57 }
 0x5b1   : > { %v2471_v6 = vpack.c.b16 %v2470_v62, %v2469_v3  ;;  %v2403_v33 = vpack.c.b16 %v2402_v7, %v2401_v8  ;;  %v4289_v62 = vld [vmem:[#allocation16 + $0x30] sm:$0xff]  ;;  %v4284_v3 = vld [vmem:[#allocation16 + $0x8] sm:$0xff] }
 0x5b2   : > { %2560 = vmatpush.bf16.msra.mxu0 %v4289_v62  ;;  %v4312_v7 = vld [vmem:[#allocation17 + $0xac] sm:$0xf]  ;;  %v3951_v62 = vld [vmem:[#allocation17 + $0x30] sm:$0xf] }
 0x5b3   : > { %v2329_v55 = vpop.f32.mrf.mxu0  ;;  %v2343_v56 = vpop.f32.mrf.mxu1  ;;  %2370 = vmatmul.bf16.vlgmr.msra.gmra.mxu2 %v2356_v53 }
 0x5b4   : > { %v2330_v58 = vadd.f32 %v2329_v55, %v2014_v41  ;;  %v2344_v59 = vadd.f32 %v2343_v56, %v2015_v42 }
 0x5b6   : > { %v2351_v61 = vpack.c.bf16 %v2344_v59, %v2330_v58 }
 0x5b8   : > { %v2408_v1 = vunpack.c.l.b16 %v2351_v61  ;;  %v2449_v2 = vunpack.c.h.b16 %v2351_v61 }
 0x5ba   : > { %v2409_v4 = vpack.c.b16 %v2408_v1, %v2407_v63  ;;  %v2450_v5 = vpack.c.b16 %v2449_v2, %v2448_v0  ;;  %v4288_v63 = vld [vmem:[#allocation16 + $0x28] sm:$0xff]  ;;  %v4287_v0 = vld [vmem:[#allocation16 + $0x20] sm:$0xff]  ;;  %v4286_v1 = vld [vmem:[#allocation16 + $0x18] sm:$0xff] }
 0x5bb   : > { %2561 = vmatpush.bf16.msra.mxu0 %v4288_v63  ;;  %v4285_v2 = vld [vmem:[#allocation16 + $0x10] sm:$0xff]  ;;  %v4298_v63 = vld [vmem:[#allocation17 + $0x38] sm:$0xf0] }
 0x5bc   : > { %2418 = vmatpush.bf16.xpose.msra.mxu3 %v2409_v4  ;;  %2462 = vmatpush.bf16.msrb.mxu2 %v2450_v5  ;;  %v4283_v4 = vld [vmem:[#allocation16] sm:$0xff]  ;;  %v4011_v5 = vld [vmem:[#allocation17 + $0xa8] sm:$0xf] }
 0x5bf   : > { %2562 = vmatpush.bf16.msra.mxu0 %v4287_v0  ;;  %v4297_v0 = vld [vmem:[#allocation17 + $0x34] sm:$0xf] }
 0x5c3   : > { %2419 = vmatmul.bf16.vlgmr.msra.gmra.mxu3 %v2403_v33  ;;  %2563 = vmatpush.bf16.msra.mxu0 %v4286_v1  ;;  %v4013_v33 = vld [vmem:[#allocation17 + $0xb4] sm:$0xf0]  ;;  %v3952_v1 = vor.u32 %v4298_v63, %v3951_v62  ;;  %v4071_v63 = vld [vmem:[#allocation19 + $0x60] sm:$0xf] }
 0x5c4   : > { %2483 = vmatpush.bf16.msrb.mxu3 %v2471_v6  ;;  %v4313_v6 = vld [vmem:[#allocation17 + $0xb0] sm:$0xf0] }
 0x5c5   : > { %v4012_v8 = vor.u32 %v4313_v6, %v4011_v5 }
 0x5c7   : > { %2564 = vmatpush.bf16.msra.mxu0 %v4285_v2  ;;  %2734 = vmatpush.bf16.msra.mxu1 %v4012_v8  ;;  %v3953_v2 = vld [vmem:[#allocation17 + $0x3c] sm:$0xf0]  ;;  %v4295_v8 = vld [vmem:[#allocation17 + $0x20] sm:$0xf0] }
 0x5c8   : > { %v3956_v5 = vor.u32 %v4297_v0, %v3953_v2  ;;  %v4328_v0 = vld [vmem:[#allocation19 + $0x68] sm:$0xf0] }
 0x5c9   : > { %v4072_v2 = vor.u32 %v4328_v0, %v4071_v63 }
 0x5cb   : > { %2565 = vmatpush.bf16.msra.mxu0 %v4284_v3  ;;  %v3959_v3 = vld [vmem:[#allocation17 + $0x38] sm:$0xf] }
 0x5cf   : > { %2566 = vmatpush.bf16.msra.mxu0 %v4283_v4  ;;  %v4299_v4 = vld [vmem:[#allocation17 + $0x40] sm:$0xf0] }
 0x5d0   : > { %v3960_v6 = vor.u32 %v4299_v4, %v3959_v3  ;;  %v4073_v3 = vld [vmem:[#allocation19 + $0x6c] sm:$0xf0]  ;;  %v4079_v4 = vld [vmem:[#allocation19 + $0x68] sm:$0xf] }
 0x636   : > { %v2371_v10 = vpop.f32.mrf.mxu2 }
 0x637   : > { %v2372_v16 = vadd.f32 %v2371_v10, %v5290_v15  ;;  %v4019_v10 = vld [vmem:[#allocation17 + $0xb0] sm:$0xf] }
 0x639   : > { %v2376_v17 = vsel %vm1215_vm1, %v2372_v16, -inf }
 0x63a   : > { %2377 = vmax.xlane.f32.xlu2 %v2376_v17  ;;  %v4016_v17 = vor.u32 %v4312_v7, %v4013_v33  ;;  %v3939_v7 = vld [vmem:[#allocation17 + $0x18] sm:$0xf]  ;;  %v4294_v33 = vld [vmem:[#allocation17 + $0x1c] sm:$0xf] }
 0x63c   : > { %2748 = vmatpush.bf16.msra.mxu2 %v4016_v17  ;;  %v3947_v17 = vld [vmem:[#allocation17 + $0x20] sm:$0xf] }
 0x63e   : > { %v2373_v18 = vpop.f32.mrf.mxu2 }
 0x63f   : > { %v2374_v19 = vadd.f32 %v2373_v18, %v5295_v20 }
 0x641   : > { %v2379_v21 = vsel %vm1215_vm1, %v2374_v19, -inf }
 0x642   : > { %2380 = vmax.xlane.f32.xlu0 %v2379_v21  ;;  %v4310_v21 = vld [vmem:[#allocation17 + $0x98] sm:$0xf0] }
 0x646   : > { %v2420_v22 = vpop.f32.mrf.mxu3 }
 0x647   : > { %v2421_v23 = vadd.f32 %v2420_v22, %v5290_v15  ;;  %v4309_v22 = vld [vmem:[#allocation17 + $0x94] sm:$0xf] }
 0x649   : > { %v2425_v24 = vsel %vm1215_vm1, %v2421_v23, -inf }
 0x64a   : > { %2426 = vmax.xlane.f32.xlu1 %v2425_v24  ;;  %v4001_v24 = vld [vmem:[#allocation17 + $0x9c] sm:$0xf0] }
 0x64e   : > { %v2422_v25 = vpop.f32.mrf.mxu3 }
 0x64f   : > { %v2423_v26 = vadd.f32 %v2422_v25, %v5295_v20  ;;  %v4007_v25 = vld [vmem:[#allocation17 + $0x98] sm:$0xf] }
 0x651   : > { %v2428_v27 = vsel %vm1215_vm1, %v2423_v26, -inf }
 0x652   : > { %2429 = vmax.xlane.f32.xlu2 %v2428_v27  ;;  %v4004_v27 = vor.u32 %v4309_v22, %v4001_v24  ;;  %v3927_v22 = vld [vmem:[#allocation17] sm:$0xf]  ;;  %v4291_v24 = vld [vmem:[#allocation17 + $0x4] sm:$0xf] }
 0x654   : > { %2749 = vmatpush.bf16.msra.mxu2 %v4004_v27  ;;  %v3935_v27 = vld [vmem:[#allocation17 + $0x8] sm:$0xf] }
 0x6ad   : > { %v2378_v28 = vpop.xlane.xlu2 %2377 }
 0x6ae   : > { %v2382_v29 = vsub.f32 %v2372_v16, %v2378_v28  ;;  %v4314_v16 = vld [vmem:[#allocation17 + $0xb8] sm:$0xf0] }
 0x6af   : > { %v4020_v18 = vor.u32 %v4314_v16, %v4019_v10  ;;  %v3940_v10 = vor.u32 %v4295_v8, %v3939_v7  ;;  %v3941_v16 = vld [vmem:[#allocation17 + $0x24] sm:$0xf0] }
 0x6b0   : > { %v2384_v30 = vmul.f32 1.442695, %v2382_v29  ;;  %v3987_v29 = vld [vmem:[#allocation17 + $0x78] sm:$0xf]  ;;  %v4059_v8 = vld [vmem:[#allocation19 + $0x48] sm:$0xf] }
 0x6b1   : > { %2762 = vmatpush.bf16.msra.mxu3 %v4020_v18  ;;  %v4296_v18 = vld [vmem:[#allocation17 + $0x28] sm:$0xf0] }
 0x6b2   : > { %4521 = vpow2.f32 %v2384_v30  ;;  %v4307_v30 = vld [vmem:[#allocation17 + $0x80] sm:$0xf0] }
 0x6b5   : > { %v2381_v31 = vpop.xlane.xlu0 %2380 }
 0x6b6   : > { %v2383_v32 = vsub.f32 %v2374_v19, %v2381_v31  ;;  %v3999_v19 = vld [vmem:[#allocation17 + $0x90] sm:$0xf]  ;;  %v4306_v31 = vld [vmem:[#allocation17 + $0x7c] sm:$0xf] }
 0x6b8   : > { %v4522_v34 = vpop.eup %4521  ;;  %v2386_v35 = vmul.f32 1.442695, %v2383_v32  ;;  %v3989_v32 = vld [vmem:[#allocation17 + $0x84] sm:$0xf0] }
 0x6b9   : > { %v2388_v36 = vsel %vm1215_vm1, %v4522_v34, 0.0 }
 0x6ba   : > { %4523 = vpow2.f32 %v2386_v35  ;;  %2389 = vadd.xlane.f32.xlu0 %v2388_v36  ;;  %v4308_v35 = vld [vmem:[#allocation17 + $0x88] sm:$0xf0]  ;;  %v3988_v36 = vor.u32 %v4307_v30, %v3987_v29 }
 0x6bd   : > { %v2427_v15 = vpop.xlane.xlu1 %2426 }
 0x6be   : > { %v2431_v37 = vsub.f32 %v2421_v23, %v2427_v15  ;;  %v4000_v23 = vor.u32 %v4310_v21, %v3999_v19  ;;  %v3992_v15 = vor.u32 %v4306_v31, %v3989_v32  ;;  %v3944_v19 = vor.u32 %v4294_v33, %v3941_v16  ;;  %v4107_v31 = vld [vmem:[#allocation19 + $0xa8] sm:$0xf]  ;;  %v4337_v32 = vld [vmem:[#allocation19 + $0xb0] sm:$0xf0] }
 0x6bf   : > { %v3948_v21 = vor.u32 %v4296_v18, %v3947_v17  ;;  %v4325_v33 = vld [vmem:[#allocation19 + $0x50] sm:$0xf0]  ;;  %v4061_v17 = vld [vmem:[#allocation19 + $0x54] sm:$0xf0]  ;;  %v4067_v18 = vld [vmem:[#allocation19 + $0x50] sm:$0xf] }
 0x6c0   : > { %v4524_v38 = vpop.eup %4523  ;;  %v2433_v39 = vmul.f32 1.442695, %v2431_v37  ;;  %2735 = vmatpush.bf16.msra.mxu1 %v4000_v23  ;;  %2750 = vmatpush.bf16.msra.mxu2 %v3992_v15  ;;  %v4292_v23 = vld [vmem:[#allocation17 + $0x8] sm:$0xf0]  ;;  %v4115_v15 = vld [vmem:[#allocation19 + $0xb0] sm:$0xf]  ;;  %v4060_v16 = vor.u32 %v4325_v33, %v4059_v8 }
 0x6c1   : > { %v2391_v20 = vsel %vm1215_vm1, %v4524_v38, 0.0 }
 0x6c2   : > { %4525 = vpow2.f32 %v2433_v39  ;;  %2392 = vadd.xlane.f32.xlu1 %v2391_v20  ;;  %v4304_v39 = vld [vmem:[#allocation17 + $0x68] sm:$0xf0]  ;;  %v4303_v20 = vld [vmem:[#allocation17 + $0x64] sm:$0xf] }
 0x6c4   : > { %2736 = vmatpush.bf16.msra.mxu1 %v3988_v36  ;;  %v4109_v36 = vld [vmem:[#allocation19 + $0xb4] sm:$0xf0] }
 0x6c5   : > { %v2430_v40 = vpop.xlane.xlu2 %2429 }
 0x6c6   : > { %v2432_v41 = vsub.f32 %v2423_v26, %v2430_v40  ;;  %v4311_v26 = vld [vmem:[#allocation17 + $0xa0] sm:$0xf0]  ;;  %v3977_v40 = vld [vmem:[#allocation17 + $0x6c] sm:$0xf0] }
 0x6c7   : > { %v4008_v28 = vor.u32 %v4311_v26, %v4007_v25  ;;  %v3928_v25 = vor.u32 %v4292_v23, %v3927_v22  ;;  %v3929_v26 = vld [vmem:[#allocation17 + $0xc] sm:$0xf0] }
 0x6c8   : > { %v4526_v42 = vpop.eup %4525  ;;  %v2435_v43 = vmul.f32 1.442695, %v2432_v41  ;;  %v3983_v41 = vld [vmem:[#allocation17 + $0x68] sm:$0xf]  ;;  %v3932_v29 = vor.u32 %v4291_v24, %v3929_v26  ;;  %v4047_v23 = vld [vmem:[#allocation19 + $0x30] sm:$0xf] }
 0x6c9   : > { %v2437_v44 = vsel %vm1215_vm1, %v4526_v42, 0.0  ;;  %2763 = vmatpush.bf16.msra.mxu3 %v4008_v28  ;;  %v4293_v28 = vld [vmem:[#allocation17 + $0x10] sm:$0xf0]  ;;  %v4322_v24 = vld [vmem:[#allocation19 + $0x38] sm:$0xf0] }
 0x6ca   : > { %4527 = vpow2.f32 %v2435_v43  ;;  %2438 = vadd.xlane.f32.xlu2 %v2437_v44  ;;  %v3980_v44 = vor.u32 %v4303_v20, %v3977_v40  ;;  %v3936_v30 = vor.u32 %v4293_v28, %v3935_v27  ;;  %v4095_v20 = vld [vmem:[#allocation19 + $0x90] sm:$0xf]  ;;  %v4334_v40 = vld [vmem:[#allocation19 + $0x98] sm:$0xf0]  ;;  %v4048_v26 = vor.u32 %v4322_v24, %v4047_v23  ;;  %v4049_v27 = vld [vmem:[#allocation19 + $0x3c] sm:$0xf0] }
 0x6cb   : > { %v4055_v28 = vld [vmem:[#allocation19 + $0x38] sm:$0xf] }
 0x6cc   : > { %2751 = vmatpush.bf16.msra.mxu2 %v3980_v44  ;;  %v4103_v44 = vld [vmem:[#allocation19 + $0x98] sm:$0xf] }
 0x6d0   : > { %v4528_v45 = vpop.eup %4527 }
 0x6d1   : > { %v2440_v46 = vsel %vm1215_vm1, %v4528_v45, 0.0 }
 0x6d2   : > { %2441 = vadd.xlane.f32.xlu0 %v2440_v46  ;;  %v3963_v46 = vld [vmem:[#allocation17 + $0x48] sm:$0xf] }
 0x72d   : > { %v2390_v47 = vpop.xlane.xlu0 %2389 }
 0x72e   : > { %4529 = vrcp.f32 %v2390_v47  ;;  %v4301_v47 = vld [vmem:[#allocation17 + $0x50] sm:$0xf0] }
 0x734   : > { %v4530_v50 = vpop.eup %4529 }
 0x735   : > { %v2393_v49 = vpop.xlane.xlu1 %2392  ;;  %v2396_v52 = vmul.f32 %v4530_v50, %v4522_v34  ;;  %v3995_v34 = vld [vmem:[#allocation17 + $0x80] sm:$0xf]  ;;  %v3971_v50 = vld [vmem:[#allocation17 + $0x50] sm:$0xf] }
 0x736   : > { %4531 = vrcp.f32 %v2393_v49  ;;  %v3996_v37 = vor.u32 %v4308_v35, %v3995_v34  ;;  %v3965_v49 = vld [vmem:[#allocation17 + $0x54] sm:$0xf0]  ;;  %v4336_v34 = vld [vmem:[#allocation19 + $0xac] sm:$0xf]  ;;  %v4108_v35 = vor.u32 %v4337_v32, %v4107_v31 }
 0x737   : > { %v4035_v32 = vld [vmem:[#allocation19 + $0x18] sm:$0xf] }
 0x738   : > { %2764 = vmatpush.bf16.msra.mxu3 %v3996_v37  ;;  %v4338_v37 = vld [vmem:[#allocation19 + $0xb8] sm:$0xf0]  ;;  %2964 = vmatpush.bf16.msrb.mxu0 %v4108_v35 }
 0x739   : > { %v4318_v35 = vld [vmem:[#allocation19 + $0x1c] sm:$0xf] }
 0x73c   : > { %v4532_v51 = vpop.eup %4531 }
 0x73d   : > { %v2397_v53 = vmul.f32 %v4532_v51, %v4524_v38  ;;  %v2439_v55 = vpop.xlane.xlu2 %2438  ;;  %v3975_v38 = vld [vmem:[#allocation17 + $0x60] sm:$0xf]  ;;  %v4302_v51 = vld [vmem:[#allocation17 + $0x58] sm:$0xf0] }
 0x73e   : > { %4533 = vrcp.f32 %v2439_v55  ;;  %v3976_v43 = vor.u32 %v4304_v39, %v3975_v38  ;;  %v4112_v38 = vor.u32 %v4336_v34, %v4109_v36  ;;  %v4116_v39 = vor.u32 %v4338_v37, %v4115_v15  ;;  %v4319_v34 = vld [vmem:[#allocation19 + $0x20] sm:$0xf0]  ;;  %v4037_v15 = vld [vmem:[#allocation19 + $0x24] sm:$0xf0]  ;;  %v4043_v37 = vld [vmem:[#allocation19 + $0x20] sm:$0xf] }
 0x73f   : > { %v2398_v54 = vpack.c.bf16 %v2397_v53, %v2396_v52  ;;  %v3964_v52 = vor.u32 %v4301_v47, %v3963_v46  ;;  %v3968_v53 = vor.u32 %v4300_v48, %v3965_v49  ;;  %v4502_v49 = vld [vmem:[%s5512_s7] ss:$0 sm:$0xff]  ;;  %v4036_v36 = vor.u32 %v4319_v34, %v4035_v32  ;;  %s3037_s7 = scalar_lea.sflag [#allocation4], %s5245_s16 }
 0x740   : > { %2737 = vmatpush.bf16.msra.mxu1 %v3976_v43  ;;  %v4097_v43 = vld [vmem:[#allocation19 + $0x9c] sm:$0xf0] }
 0x741   : > { %3892 = vmatmul.msk.bf16.vlgmr.msrb.gmra.mxu3 %vm1215_vm1, %v2398_v54  ;;  %v3972_v54 = vor.u32 %v4302_v51, %v3971_v50  ;;  %2752 = vmatpush.bf16.msra.mxu2 %v3968_v53 }
 0x744   : > { %v4534_v57 = vpop.eup %4533  ;;  %2738 = vmatpush.bf16.msra.mxu1 %v3964_v52 }
 0x745   : > { %v2442_v56 = vpop.xlane.xlu0 %2441  ;;  %v2445_v59 = vmul.f32 %v4534_v57, %v4526_v42  ;;  %v4305_v42 = vld [vmem:[#allocation17 + $0x70] sm:$0xf0]  ;;  %2753 = vmatpush.bf16.msra.mxu2 %v3956_v5 }
 0x746   : > { %4535 = vrcp.f32 %v2442_v56  ;;  %v4329_v5 = vld [vmem:[#allocation19 + $0x70] sm:$0xf0] }
 0x747   : > { %v4080_v7 = vor.u32 %v4329_v5, %v4079_v4 }
 0x748   : > { %2739 = vmatpush.bf16.msra.mxu1 %v3952_v1  ;;  %v4327_v1 = vld [vmem:[#allocation19 + $0x64] sm:$0xf] }
 0x749   : > { %2754 = vmatpush.bf16.msra.mxu2 %v3944_v19 }
 0x74c   : > { %v4536_v58 = vpop.eup %4535  ;;  %2740 = vmatpush.bf16.msra.mxu1 %v3940_v10  ;;  %v4324_v10 = vld [vmem:[#allocation19 + $0x4c] sm:$0xf] }
 0x74d   : > { %v2446_v60 = vmul.f32 %v4536_v58, %v4528_v45  ;;  %v3984_v45 = vor.u32 %v4305_v42, %v3983_v41  ;;  %2755 = vmatpush.bf16.msra.mxu2 %v3932_v29  ;;  %v4333_v41 = vld [vmem:[#allocation19 + $0x94] sm:$0xf]  ;;  %v4096_v42 = vor.u32 %v4334_v40, %v4095_v20  ;;  %v4064_v19 = vor.u32 %v4324_v10, %v4061_v17  ;;  %v4323_v29 = vld [vmem:[#allocation19 + $0x40] sm:$0xf0]  ;;  %v4023_v40 = vld [vmem:[#allocation19] sm:$0xf] }
 0x74e   : > { %v4100_v46 = vor.u32 %v4333_v41, %v4097_v43  ;;  %v4056_v31 = vor.u32 %v4323_v29, %v4055_v28  ;;  %v4316_v41 = vld [vmem:[#allocation19 + $0x8] sm:$0xf0] }
 0x74f   : > { %v2447_v61 = vpack.c.bf16 %v2446_v60, %v2445_v59  ;;  %2765 = vmatpush.bf16.msra.mxu3 %v3984_v45  ;;  %v4335_v45 = vld [vmem:[#allocation19 + $0xa0] sm:$0xf0]  ;;  %2965 = vmatpush.bf16.msrb.mxu0 %v4096_v42  ;;  %v4024_v43 = vor.u32 %v4316_v41, %v4023_v40 }
 0x750   : > { %2741 = vmatpush.bf16.msra.mxu1 %v3928_v25  ;;  %v4104_v47 = vor.u32 %v4335_v45, %v4103_v44  ;;  %v4321_v25 = vld [vmem:[#allocation19 + $0x34] sm:$0xf]  ;;  %v4315_v42 = vld [vmem:[#allocation19 + $0x4] sm:$0xf]  ;;  %v4025_v44 = vld [vmem:[#allocation19 + $0xc] sm:$0xf0] }
 0x751   : > { %3891 = vmatmul.msk.bf16.vlgmr.msrb.gmra.mxu2 %vm1215_vm1, %v2447_v61  ;;  %v4031_v45 = vld [vmem:[#allocation19 + $0x8] sm:$0xf] }
 0x752   : > { %2992 = vmatpush.bf16.msrb.mxu2 %v4116_v39  ;;  %v4040_v39 = vor.u32 %v4318_v35, %v4037_v15 }
 0x753   : > { %2766 = vmatpush.bf16.msra.mxu3 %v3972_v54  ;;  %v4083_v54 = vld [vmem:[#allocation19 + $0x78] sm:$0xf] }
 0x754   : > { %2978 = vmatpush.bf16.msrb.mxu1 %v4112_v38  ;;  %v4320_v38 = vld [vmem:[#allocation19 + $0x28] sm:$0xf0] }
 0x755   : > { %v4044_v20 = vor.u32 %v4320_v38, %v4043_v37 }
 0x756   : > { %2993 = vmatpush.bf16.msrb.mxu2 %v4104_v47  ;;  %v4028_v47 = vor.u32 %v4315_v42, %v4025_v44 }
 0x757   : > { %2767 = vmatpush.bf16.msra.mxu3 %v3960_v6  ;;  %v4076_v6 = vor.u32 %v4327_v1, %v4073_v3 }
 0x758   : > { %2979 = vmatpush.bf16.msrb.mxu1 %v4100_v46  ;;  %v4317_v46 = vld [vmem:[#allocation19 + $0x10] sm:$0xf0] }
 0x75b   : > { %2768 = vmatpush.bf16.msra.mxu3 %v3948_v21  ;;  %v4326_v21 = vld [vmem:[#allocation19 + $0x58] sm:$0xf0] }
 0x75c   : > { %v4068_v22 = vor.u32 %v4326_v21, %v4067_v18 }
 0x75f   : > { %2769 = vmatpush.bf16.msra.mxu3 %v3936_v30  ;;  %v4052_v30 = vor.u32 %v4321_v25, %v4049_v27 }
 0x7c4   : > { %v2485_v55 = vpop.f32.mrf.mxu3 }
 0x7cc   : > { %v2487_v57 = vpop.f32.mrf.mxu3 }
 0x7d4   : > { %v2464_v56 = vpop.f32.mrf.mxu2 }
 0x7d5   : > { %v2486_v59 = vadd.f32 %v2485_v55, %v2464_v56  ;;  %v4331_v55 = vld [vmem:[#allocation19 + $0x80] sm:$0xf0]  ;;  %v4330_v56 = vld [vmem:[#allocation19 + $0x7c] sm:$0xf] }
 0x7dc   : > { %v2466_v58 = vpop.f32.mrf.mxu2 }
 0x7dd   : > { %v2488_v60 = vadd.f32 %v2487_v57, %v2466_v58  ;;  %v4084_v57 = vor.u32 %v4331_v55, %v4083_v54  ;;  %v4085_v58 = vld [vmem:[#allocation19 + $0x84] sm:$0xf0]  ;;  %v4503_v55 = vld [vmem:[%s5513_s11] ss:$0 sm:$0xff] }
 0x7df   : > { %v2490_v61 = vpack.c.bf16 %v2488_v60, %v2486_v59  ;;  %v4091_v59 = vld [vmem:[#allocation19 + $0x80] sm:$0xf]  ;;  %v4332_v60 = vld [vmem:[#allocation19 + $0x88] sm:$0xf0]  ;;  %2966 = vmatpush.bf16.msrb.mxu0 %v4084_v57 }
 0x7e0   : > { %v4092_v62 = vor.u32 %v4332_v60, %v4091_v59 }
 0x7e1   : > { %2567 = vmatmul.bf16.vlgmr.msra.gmra.mxu0 %v2490_v61  ;;  %v4088_v61 = vor.u32 %v4330_v56, %v4085_v58 }
 0x7e2   : > { %2994 = vmatpush.bf16.msrb.mxu2 %v4092_v62 }
 0x7e3   : > { %2980 = vmatpush.bf16.msrb.mxu1 %v4088_v61  ;;  %2967 = vmatpush.bf16.msrb.mxu0 %v4072_v2 }
 0x7e6   : > { %2995 = vmatpush.bf16.msrb.mxu2 %v4080_v7 }
 0x7e7   : > { %2981 = vmatpush.bf16.msrb.mxu1 %v4076_v6  ;;  %2968 = vmatpush.bf16.msrb.mxu0 %v4060_v16 }
 0x7ea   : > { %2996 = vmatpush.bf16.msrb.mxu2 %v4068_v22 }
 0x7eb   : > { %2982 = vmatpush.bf16.msrb.mxu1 %v4064_v19  ;;  %2969 = vmatpush.bf16.msrb.mxu0 %v4048_v26  ;;  %v4504_v19 = vld [vmem:[%s5514_s19] ss:$0 sm:$0xff] }
 0x7ee   : > { %2997 = vmatpush.bf16.msrb.mxu2 %v4056_v31 }
 0x7ef   : > { %2983 = vmatpush.bf16.msrb.mxu1 %v4052_v30  ;;  %2970 = vmatpush.bf16.msrb.mxu0 %v4036_v36 }
 0x7f2   : > { %2998 = vmatpush.bf16.msrb.mxu2 %v4044_v20 }
 0x7f3   : > { %2984 = vmatpush.bf16.msrb.mxu1 %v4040_v39  ;;  %2971 = vmatpush.bf16.msrb.mxu0 %v4024_v43 }
 0x7f7   : > { %2985 = vmatpush.bf16.msrb.mxu1 %v4028_v47 }
 0x85e   : > { %v2568_v48 = vpop.f32.mrf.mxu0 }
 0x85f   : > { %v2569_v51 = vadd.f32 %v4502_v49, %v2568_v48  ;;  %v4032_v48 = vor.u32 %v4317_v46, %v4031_v45 }
 0x861   : > { %2999 = vmatpush.bf16.msrb.mxu2 %v4032_v48 }
 0x866   : > { %v2570_v50 = vpop.f32.mrf.mxu0 }
 0x867   : > { %v2571_v52 = vadd.f32 %v4502_v49, %v2570_v50 }
 0x869   : > { %v2573_v53 = vpack.c.bf16 %v2571_v52, %v2569_v51 }
 0x86b   : > { %2742 = vmatmul.bf16.vlgmr.msra.gmra.mxu1 %v2573_v53  ;;  %2756 = vmatmul.bf16.vlgmr.msra.gmra.mxu2 %v2573_v53 }
 0x86c   : > { %2770 = vmatmul.bf16.vlgmr.msra.gmra.mxu3 %v2573_v53 }
 0x8e8   : > { %v2743_v49 = vpop.f32.mrf.mxu1 }
 0x8e9   : > { %v2782_v53 = vrot.slane %v2743_v49, 4 }
 0x8ee   : > { %v2757_v50 = vpop.f32.mrf.mxu2 }
 0x8ef   : > { %v2771_v51 = vpop.f32.mrf.mxu3  ;;  %v2793_v59 = vrot.slane %v2757_v50, 6 }
 0x8f0   : > { %v2745_v52 = vpop.f32.mrf.mxu1  ;;  %v2780_v60 = vadd.f32 %v4503_v55, %v2771_v51 }
 0x8f1   : > { %v2783_v54 = vrot.slane %v2745_v52, 4 }
 0x8f3   : > { %v2786_v56 = vsel %vm2784_vm7, %v2783_v54, %v2782_v53  ;;  %v2785_v3 = vsel %vm2784_vm7, %v2782_v53, %v2783_v54 }
 0x8f4   : > { %v2789_v57 = vsel %vm2787_vm8, %v2786_v56, 0.0 }
 0x8f5   : > { %v2791_v0 = vadd.f32 %v2789_v57, %v2780_v60 }
 0x8f6   : > { %v2759_v58 = vpop.f32.mrf.mxu2 }
 0x8f7   : > { %v2794_v61 = vrot.slane %v2759_v58, 6  ;;  %v2773_v62 = vpop.f32.mrf.mxu3 }
 0x8f8   : > { %v2781_v63 = vadd.f32 %v4503_v55, %v2773_v62 }
 0x8f9   : > { %v2795_v1 = vsel %vm1624_vm3, %v2793_v59, %v2794_v61  ;;  %v2796_v2 = vsel %vm1624_vm3, %v2794_v61, %v2793_v59 }
 0x8fa   : > { %v2797_v4 = vsel %vm1627_vm4, %v2796_v2, 0.0  ;;  %v2792_v5 = vadd.f32 %v2785_v3, %v2781_v63 }
 0x8fb   : > { %v2799_v6 = vadd.f32 %v2797_v4, %v2791_v0 }
 0x8fc   : > { %v2800_v7 = vadd.f32 %v2795_v1, %v2792_v5 }
 0x8fd   : > { %v2801_v8 = vmax.f32 %v2799_v6, 0.0 }
 0x8fe   : > { %v2802_v33 = vmax.f32 %v2800_v7, 0.0 }
 0x900   : > { %v2803_v10 = vpack.c.bf16 %v2802_v33, %v2801_v8 }
 0x902   : > { %2972 = vmatmul.bf16.vlgmr.msrb.gmra.mxu0 %v2803_v10  ;;  %2986 = vmatmul.bf16.vlgmr.msrb.gmra.mxu1 %v2803_v10 }
 0x903   : > { %3000 = vmatmul.bf16.vlgmr.msrb.gmra.mxu2 %v2803_v10 }
 0x97f   : > { %v2973_v16 = vpop.f32.mrf.mxu0  ;;  %v2987_v17 = vpop.f32.mrf.mxu1 }
 0x980   : > { %v3012_v23 = vrot.slane %v2973_v16, 4  ;;  %v3020_v24 = vrot.slane %v2987_v17, 6 }
 0x986   : > { %v3001_v18 = vpop.f32.mrf.mxu2 }
 0x987   : > { %v2975_v21 = vpop.f32.mrf.mxu0  ;;  %v2989_v22 = vpop.f32.mrf.mxu1  ;;  %v3010_v27 = vadd.f32 %v4504_v19, %v3001_v18 }
 0x988   : > { %v3013_v25 = vrot.slane %v2975_v21, 4  ;;  %v3021_v26 = vrot.slane %v2989_v22, 6 }
 0x98a   : > { %v3015_v28 = vsel %vm2784_vm7, %v3013_v25, %v3012_v23  ;;  %v3023_v29 = vsel %vm1624_vm3, %v3021_v26, %v3020_v24  ;;  %v3014_v37 = vsel %vm2784_vm7, %v3012_v23, %v3013_v25  ;;  %v3022_v39 = vsel %vm1624_vm3, %v3020_v24, %v3021_v26 }
 0x98b   : > { %v3016_v30 = vsel %vm2787_vm8, %v3015_v28, 0.0  ;;  %v3024_v32 = vsel %vm1627_vm4, %v3023_v29, 0.0 }
 0x98c   : > { %v3018_v31 = vadd.f32 %v3016_v30, %v3010_v27 }
 0x98e   : > { %v3026_v34 = vadd.f32 %v3024_v32, %v3018_v31  ;;  %v3003_v35 = vpop.f32.mrf.mxu2 }
 0x98f   : > { %v3011_v36 = vadd.f32 %v4504_v19, %v3003_v35 }
 0x990   : > { %v3028_v15 = vmax.f32 %v3026_v34, 0.0 }
 0x991   : > { %v3019_v38 = vadd.f32 %v3014_v37, %v3011_v36 }
 0x992   : > { %v3030_v20 = vadd.f32 %v3028_v15, %v1957_v13 }
 0x993   : > { %v3027_v40 = vadd.f32 %v3022_v39, %v3019_v38 }
 0x994   : > { %v3032_v41 = vmax.f32 %v3030_v20, 0.0 }
 0x995   : > { %v3029_v42 = vmax.f32 %v3027_v40, 0.0 }
 0x996   : > { %3034 = vst [vmem:[%s785_s24] sm:$0xff] %v3032_v41 }
 0x997   : > { %v3031_v12 = vadd.f32 %v3029_v42, %v1958_v14 }
 0x999   : > { %v3033_v9 = vmax.f32 %v3031_v12, 0.0 }
 0x99b   : > { %3035 = vst [vmem:[%s785_s24 + $0x8] sm:$0xff] %v3033_v9 }
 0x99c   : > { %4894 = shalt.err (!%p4891_p9)
}
 0x99d   : > { %s4974_s16 = smov 128   ;;  %s4975_s22 = smov 8  }
 0x99e   : > { %4382 = dma.vmem_to_hbm [thread:$0]  (%p5214_p4), %s3050_s25, 256, %s3052_s6, %s3037_s7, %s4974_s16, %s4974_s16, %s4975_s22  }
 0x99f PF: > { %s3066_s26 = sand.u32 1, %s4941_s0   ;;  %p5516_p10 = scmp.ge.s32.totalorder %s4953_s21, 2 }
 0x9a0   : > { %s3067_s18 = scalar_lea.sflag [#allocation4], %s3066_s26 }
 0x9a1   : > { %p4420_p13 = pnand %p5516_p10, %p5218_p6 }
 0x9a3   : > { %p4421_p11 = pneg %p4420_p13 }
 0x9a5   : > { %4936 = dma.done.wait (%p4421_p11), %s3067_s18, 256  }
 0x9a6   : > { %4938 = vsyncadd (%p4421_p11), %s3067_s18, 4294967040  ;;  %p37_p0 = scmp.ge.s32.totalorder %s5188_s1, 4   ;;  %s5517_s0 = smov %s4945_s30 }
 0x9a7   : > { %s5518_s30 = smov %s4949_s20  ;;  %s5519_s20 = smov %s5199_s2 }
 0x9a8   : > { %s5520_s21 = smov %s5188_s1  ;;  %39 = sbr.rel (!%p37_p0) target bundleno = 26 (0x1a), region = 181 }
 0x9ad   :  { %3073 = vsyncpa [#allocation3], 1 }
 0x9ae   :  { %3075 = vsyncpa [#allocation3 + $0x1], 1 }
 0x9af   :  { %3076 = vsyncpa [#allocation6], 1 }
 0x9b0   :  { %3077 = vsyncpa [#allocation9], 1 }
 0x9b1   :  { %3078 = vsyncpa [#allocation12], 1 }
 0x9b2   :  { %3079 = vsyncpa [#allocation15], 1 }
 0x9b3   :  { %3080 = vsyncpa [#allocation18], 1 }
 0x9b4   :  { %3081 = vsyncpa [#allocation4], 1 }
 0x9b5   :  { %3083 = vsyncpa [#allocation4 + $0x1], 1 }

</bundles_post_ra>
